<compile_context>
chip_gen: v6e
topology: v6e:2x2x1
jax: 0.10.0
libtpu: 0.0.40
codegen_flags: <defaults>
</compile_context>

<pallas_src>
import functools

import jax
import jax.numpy as jnp
from jax.experimental import pallas as pl
from jax.experimental.pallas import tpu as pltpu


def _cbr_kernel(x_ref, w_ref, ss_ref, o_ref, col_ref, *, ksize, pad):
    """One (batch, row-strip) tile per grid step.

    x_ref:   (1, Hp, Wp, Cin)   spatially padded image of batch n (block index
                                constant across strips -> single DMA per batch)
    w_ref:   (K*K*Cin, Cp)      BN-scale-folded conv weights, im2col layout
    ss_ref:  (2, Cp)            row 0 = BN shift, row 1 = PReLU alpha
    o_ref:   (1, TH, W, Cp)     output strip (Cp padded to 128 -> lane-dense)
    col_ref: (TH, W, K*K*Cin)   im2col scratch (VMEM)
    """
    TH, W, Cp = o_ref.shape[1], o_ref.shape[2], o_ref.shape[3]
    Cin = x_ref.shape[3]
    KKC = w_ref.shape[0]

    # Rows of this strip (plus K-1 halo rows) from the resident padded image.
    row0 = pl.multiple_of(pl.program_id(1) * TH, TH)
    x_strip = x_ref[0, pl.ds(row0, TH + 2 * pad), :, :]       # (TH+2p, Wp, Cin)

    # im2col: one lane-offset store per tap into the VMEM scratch.
    for kh in range(ksize):
        for kw in range(ksize):
            j = kh * ksize + kw
            col_ref[:, :, j * Cin:(j + 1) * Cin] = x_strip[kh:kh + TH, kw:kw + W, :]

    col = col_ref[...].reshape(TH * W, KKC)

    # Single MXU matmul, contraction = K*K*Cin, f32 accumulation.
    y = jnp.dot(col, w_ref[...], preferred_element_type=jnp.float32)

    # BatchNorm shift (scale already folded into weights) + per-channel PReLU.
    y = y + ss_ref[0, :]
    out = jnp.where(y >= 0.0, y, ss_ref[1, :] * y)
    o_ref[...] = out.reshape(1, TH, W, Cp).astype(o_ref.dtype)


def cbr_pallas(x_nchw, weight_oihw, gamma, beta, running_mean, running_var,
               alpha, *, eps=1e-5, row_tile=None, compute_dtype=jnp.float32):
    """CBR forward.  x_nchw: (N, Cin, H, W) -> (N, Cout, H, W) float32."""
    N, Cin, H, W = x_nchw.shape
    Cout, Cin_w, K, _ = weight_oihw.shape
    assert Cin_w == Cin, "groups != 1 not supported"
    pad = (K - 1) // 2  # stride = 1, dilation = 1

    # Pick an H-strip size (largest power-of-two divisor of H up to 128).
    if row_tile is None:
        row_tile = H
        for cand in (128, 64, 32, 16, 8):
            if H % cand == 0:
                row_tile = cand
                break
    assert H % row_tile == 0, "row_tile must divide H"
    TH = row_tile
    n_strips = H // TH

    # --- wrapper glue (plain JAX): layout, halo padding, BN folding ---
    # TODO(synk): the NCHW<->NHWC transposes + jnp.pad are extra XLA HBM passes;
    # a fully fused version would accept NHWC and zero-fill the halo in-kernel.
    x_nhwc = jnp.transpose(x_nchw, (0, 2, 3, 1))
    x_pad = jnp.pad(x_nhwc, ((0, 0), (pad, pad), (pad, pad), (0, 0)))
    x_pad = x_pad.astype(compute_dtype)

    scale = (gamma / jnp.sqrt(running_var + eps)).astype(jnp.float32)
    shift = (beta - running_mean * scale).astype(jnp.float32)

    # Fold BN scale into the conv weights; lay weights out for im2col.
    w_hwio = jnp.transpose(weight_oihw, (2, 3, 1, 0)).astype(jnp.float32)
    w_hwio = w_hwio * scale[None, None, None, :]
    w_flat = w_hwio.reshape(K * K * Cin, Cout)

    # Pad Cout to the lane width -> dense MXU output columns + unmasked stores.
    Cp = ((Cout + 127) // 128) * 128
    if Cp != Cout:
        w_flat = jnp.pad(w_flat, ((0, 0), (0, Cp - Cout)))
    w_flat = w_flat.astype(compute_dtype)

    ss = jnp.stack([shift, alpha.astype(jnp.float32)], axis=0)       # (2, Cout)
    if Cp != Cout:
        ss = jnp.pad(ss, ((0, 0), (0, Cp - Cout)))

    Hp, Wp = H + 2 * pad, W + 2 * pad
    KKC = K * K * Cin

    # Size the scoped VMEM limit from the actual tiles (headroom, v7x-safe cap).
    esize = jnp.dtype(compute_dtype).itemsize
    vmem_needed = (2 * Hp * Wp * Cin * esize      # double-buffered input image
                   + KKC * Cp * esize             # weights (resident)
                   + 2 * Cp * 4                   # shift/alpha
                   + 2 * TH * W * Cp * 4          # double-buffered output strip
                   + TH * W * KKC * esize         # im2col scratch
                   + 2 * TH * W * Cp * 4)         # live matmul/epilogue values
    vmem_limit = int(min(max(3 * vmem_needed, 32 * 1024 * 1024),
                         64 * 1024 * 1024))

    kernel = functools.partial(_cbr_kernel, ksize=K, pad=pad)

    out = pl.pallas_call(
        kernel,
        out_shape=jax.ShapeDtypeStruct((N, H, W, Cp), jnp.float32),
        grid_spec=pltpu.PrefetchScalarGridSpec(
            num_scalar_prefetch=0,
            grid=(N, n_strips),
            in_specs=[
                pl.BlockSpec((1, Hp, Wp, Cin), lambda n, s: (n, 0, 0, 0)),
                pl.BlockSpec((KKC, Cp), lambda n, s: (0, 0)),
                pl.BlockSpec((2, Cp), lambda n, s: (0, 0)),
            ],
            out_specs=pl.BlockSpec((1, TH, W, Cp), lambda n, s: (n, s, 0, 0)),
            scratch_shapes=[pltpu.VMEM((TH, W, KKC), compute_dtype)],
        ),
        compiler_params=pltpu.CompilerParams(
            dimension_semantics=("parallel", "parallel"),
            vmem_limit_bytes=vmem_limit),
    )(x_pad, w_flat, ss)

    if Cp != Cout:
        out = out[..., :Cout]
    return jnp.transpose(out, (0, 3, 1, 2))                          # NCHW


def cbr_reference(x_nchw, weight_oihw, gamma, beta, running_mean, running_var,
                  alpha, *, eps=1e-5):
    """Pure-JAX reference (matches PyTorch eval-mode CBR)."""
    y = jax.lax.conv_general_dilated(
        x_nchw, weight_oihw, window_strides=(1, 1), padding="SAME",
        dimension_numbers=("NCHW", "OIHW", "NCHW"))
    c = y.shape[1]
    scale = (gamma / jnp.sqrt(running_var + eps)).reshape(1, c, 1, 1)
    shift = (beta - running_mean * gamma / jnp.sqrt(running_var + eps)).reshape(1, c, 1, 1)
    y = y * scale + shift
    a = alpha.reshape(1, c, 1, 1)
    return jnp.where(y >= 0.0, y, a * y)


if __name__ == "__main__":
    # Small, CBR-consistent shapes: N=2, Cin=4, Cout=8, H=W=16, ksize=3.
    N, Cin, Cout, H, W, K = 2, 4, 8, 16, 16, 3

    key = jax.random.PRNGKey(0)
    kx, kw, kg, kb, km, kv, ka = jax.random.split(key, 7)

    x = jax.random.normal(kx, (N, Cin, H, W), dtype=jnp.float32)
    weight = jax.random.normal(kw, (Cout, Cin, K, K), dtype=jnp.float32) * 0.1
    gamma = 1.0 + 0.1 * jax.random.normal(kg, (Cout,), dtype=jnp.float32)
    beta = 0.1 * jax.random.normal(kb, (Cout,), dtype=jnp.float32)
    running_mean = 0.1 * jax.random.normal(km, (Cout,), dtype=jnp.float32)
    running_var = jnp.abs(1.0 + 0.1 * jax.random.normal(kv, (Cout,), dtype=jnp.float32))
    prelu_alpha = jnp.full((Cout,), 0.25, dtype=jnp.float32)  # PyTorch PReLU default

    # row_tile=8 -> 2 strips per batch element (exercises the strip indexing).
    out = cbr_pallas(x, weight, gamma, beta, running_mean, running_var,
                     prelu_alpha, row_tile=8)
    out = jax.block_until_ready(out)

    ref = cbr_reference(x, weight, gamma, beta, running_mean, running_var,
                        prelu_alpha)
    assert out.shape == (N, Cout, H, W)
    assert jnp.allclose(out, ref, atol=1e-4, rtol=1e-4), "mismatch vs reference"

    print("KERNEL_OK")
</pallas_src>

<mosaic_0001>
module attributes {stable_mosaic.version = 11 : i64} {
  func.func @_cbr_kernel(%arg0: i32, %arg1: i32, %arg2: memref<1x18x18x4xf32, #tpu.memory_space<vmem>>, %arg3: memref<36x128xf32, #tpu.memory_space<vmem>>, %arg4: memref<2x128xf32, #tpu.memory_space<vmem>>, %arg5: memref<1x8x16x128xf32, #tpu.memory_space<vmem>>, %arg6: memref<8x16x36xf32, #tpu.memory_space<vmem>>) attributes {dimension_semantics = [#tpu.dimension_semantics<parallel>, #tpu.dimension_semantics<parallel>], iteration_bounds = array<i64: 2, 2>, scalar_prefetch = 0 : i64, scratch_operands = 1 : i64, tpu.core_type = #tpu.core_type<tc>, window_params = [{transform_indices = @transform_0, window_bounds = array<i64: 1, 18, 18, 4>}, {pipeline_mode = #tpu.pipeline_mode<synchronous>, transform_indices = @transform_1, window_bounds = array<i64: 36, 128>}, {pipeline_mode = #tpu.pipeline_mode<synchronous>, transform_indices = @transform_2, window_bounds = array<i64: 2, 128>}, {transform_indices = @transform_3, window_bounds = array<i64: 1, 8, 16, 128>}]} {
    %c8_i32 = arith.constant 8 : i32
    %0 = arith.muli %arg1, %c8_i32 : i32
    %1 = tpu.assume_multiple %0, 8 : i32
    %c0 = arith.constant 0 : index
    %2 = arith.index_cast %1 : i32 to index
    %c0_0 = arith.constant 0 : index
    %c0_1 = arith.constant 0 : index
    %3 = vector.load %arg2[%c0, %2, %c0_0, %c0_1] : memref<1x18x18x4xf32, #tpu.memory_space<vmem>>, vector<1x10x18x4xf32>
    %4 = vector.shape_cast %3 : vector<1x10x18x4xf32> to vector<10x18x4xf32>
    %5 = vector.extract_strided_slice %4 {offsets = [0, 0, 0], sizes = [8, 16, 4], strides = [1, 1, 1]} : vector<10x18x4xf32> to vector<8x16x4xf32>
    %c0_2 = arith.constant 0 : index
    %c0_3 = arith.constant 0 : index
    %c0_4 = arith.constant 0 : index
    %6 = vector.load %arg6[%c0_2, %c0_3, %c0_4] : memref<8x16x36xf32, #tpu.memory_space<vmem>>, vector<8x16x4xf32>
    tpu.vector_store %arg6[%c0_2, %c0_3, %c0_4], %5 {strides = array<i32>} : memref<8x16x36xf32, #tpu.memory_space<vmem>>, vector<8x16x4xf32>,
    %7 = vector.extract_strided_slice %4 {offsets = [0, 1, 0], sizes = [8, 16, 4], strides = [1, 1, 1]} : vector<10x18x4xf32> to vector<8x16x4xf32>
    %c0_5 = arith.constant 0 : index
    %c0_6 = arith.constant 0 : index
    %c4 = arith.constant 4 : index
    %8 = vector.load %arg6[%c0_5, %c0_6, %c4] : memref<8x16x36xf32, #tpu.memory_space<vmem>>, vector<8x16x4xf32>
    tpu.vector_store %arg6[%c0_5, %c0_6, %c4], %7 {strides = array<i32>} : memref<8x16x36xf32, #tpu.memory_space<vmem>>, vector<8x16x4xf32>,
    %9 = vector.extract_strided_slice %4 {offsets = [0, 2, 0], sizes = [8, 16, 4], strides = [1, 1, 1]} : vector<10x18x4xf32> to vector<8x16x4xf32>
    %c0_7 = arith.constant 0 : index
    %c0_8 = arith.constant 0 : index
    %c8 = arith.constant 8 : index
    %10 = vector.load %arg6[%c0_7, %c0_8, %c8] : memref<8x16x36xf32, #tpu.memory_space<vmem>>, vector<8x16x4xf32>
    tpu.vector_store %arg6[%c0_7, %c0_8, %c8], %9 {strides = array<i32>} : memref<8x16x36xf32, #tpu.memory_space<vmem>>, vector<8x16x4xf32>,
    %11 = vector.extract_strided_slice %4 {offsets = [1, 0, 0], sizes = [8, 16, 4], strides = [1, 1, 1]} : vector<10x18x4xf32> to vector<8x16x4xf32>
    %c0_9 = arith.constant 0 : index
    %c0_10 = arith.constant 0 : index
    %c12 = arith.constant 12 : index
    %12 = vector.load %arg6[%c0_9, %c0_10, %c12] : memref<8x16x36xf32, #tpu.memory_space<vmem>>, vector<8x16x4xf32>
    tpu.vector_store %arg6[%c0_9, %c0_10, %c12], %11 {strides = array<i32>} : memref<8x16x36xf32, #tpu.memory_space<vmem>>, vector<8x16x4xf32>,
    %13 = vector.extract_strided_slice %4 {offsets = [1, 1, 0], sizes = [8, 16, 4], strides = [1, 1, 1]} : vector<10x18x4xf32> to vector<8x16x4xf32>
    %c0_11 = arith.constant 0 : index
    %c0_12 = arith.constant 0 : index
    %c16 = arith.constant 16 : index
    %14 = vector.load %arg6[%c0_11, %c0_12, %c16] : memref<8x16x36xf32, #tpu.memory_space<vmem>>, vector<8x16x4xf32>
    tpu.vector_store %arg6[%c0_11, %c0_12, %c16], %13 {strides = array<i32>} : memref<8x16x36xf32, #tpu.memory_space<vmem>>, vector<8x16x4xf32>,
    %15 = vector.extract_strided_slice %4 {offsets = [1, 2, 0], sizes = [8, 16, 4], strides = [1, 1, 1]} : vector<10x18x4xf32> to vector<8x16x4xf32>
    %c0_13 = arith.constant 0 : index
    %c0_14 = arith.constant 0 : index
    %c20 = arith.constant 20 : index
    %16 = vector.load %arg6[%c0_13, %c0_14, %c20] : memref<8x16x36xf32, #tpu.memory_space<vmem>>, vector<8x16x4xf32>
    tpu.vector_store %arg6[%c0_13, %c0_14, %c20], %15 {strides = array<i32>} : memref<8x16x36xf32, #tpu.memory_space<vmem>>, vector<8x16x4xf32>,
    %17 = vector.extract_strided_slice %4 {offsets = [2, 0, 0], sizes = [8, 16, 4], strides = [1, 1, 1]} : vector<10x18x4xf32> to vector<8x16x4xf32>
    %c0_15 = arith.constant 0 : index
    %c0_16 = arith.constant 0 : index
    %c24 = arith.constant 24 : index
    %18 = vector.load %arg6[%c0_15, %c0_16, %c24] : memref<8x16x36xf32, #tpu.memory_space<vmem>>, vector<8x16x4xf32>
    tpu.vector_store %arg6[%c0_15, %c0_16, %c24], %17 {strides = array<i32>} : memref<8x16x36xf32, #tpu.memory_space<vmem>>, vector<8x16x4xf32>,
    %19 = vector.extract_strided_slice %4 {offsets = [2, 1, 0], sizes = [8, 16, 4], strides = [1, 1, 1]} : vector<10x18x4xf32> to vector<8x16x4xf32>
    %c0_17 = arith.constant 0 : index
    %c0_18 = arith.constant 0 : index
    %c28 = arith.constant 28 : index
    %20 = vector.load %arg6[%c0_17, %c0_18, %c28] : memref<8x16x36xf32, #tpu.memory_space<vmem>>, vector<8x16x4xf32>
    tpu.vector_store %arg6[%c0_17, %c0_18, %c28], %19 {strides = array<i32>} : memref<8x16x36xf32, #tpu.memory_space<vmem>>, vector<8x16x4xf32>,
    %21 = vector.extract_strided_slice %4 {offsets = [2, 2, 0], sizes = [8, 16, 4], strides = [1, 1, 1]} : vector<10x18x4xf32> to vector<8x16x4xf32>
    %c0_19 = arith.constant 0 : index
    %c0_20 = arith.constant 0 : index
    %c32 = arith.constant 32 : index
    %22 = vector.load %arg6[%c0_19, %c0_20, %c32] : memref<8x16x36xf32, #tpu.memory_space<vmem>>, vector<8x16x4xf32>
    tpu.vector_store %arg6[%c0_19, %c0_20, %c32], %21 {strides = array<i32>} : memref<8x16x36xf32, #tpu.memory_space<vmem>>, vector<8x16x4xf32>,
    %c0_21 = arith.constant 0 : index
    %c0_22 = arith.constant 0 : index
    %c0_23 = arith.constant 0 : index
    %23 = vector.load %arg6[%c0_21, %c0_22, %c0_23] : memref<8x16x36xf32, #tpu.memory_space<vmem>>, vector<8x16x36xf32>
    %24 = vector.shape_cast %23 : vector<8x16x36xf32> to vector<128x36xf32>
    %c0_24 = arith.constant 0 : index
    %c0_25 = arith.constant 0 : index
    %25 = vector.load %arg3[%c0_24, %c0_25] : memref<36x128xf32, #tpu.memory_space<vmem>>, vector<36x128xf32>
    %cst = arith.constant dense<0.000000e+00> : vector<128x128xf32>
    %26 = tpu.matmul %24, %25, %cst {dimension_numbers = #tpu.dot_dimension_numbers<[1], [0], [0], [1], [0, 0, 1, 1], [], []>} : vector<128x36xf32>, vector<36x128xf32>, vector<128x128xf32> -> vector<128x128xf32>
    %c0_26 = arith.constant 0 : index
    %c0_27 = arith.constant 0 : index
    %27 = vector.load %arg4[%c0_26, %c0_27] : memref<2x128xf32, #tpu.memory_space<vmem>>, vector<1x128xf32>
    %28 = vector.shape_cast %27 : vector<1x128xf32> to vector<128xf32>
    %29 = vector.shape_cast %28 : vector<128xf32> to vector<1x128xf32>
    %30 = vector.broadcast %29 : vector<1x128xf32> to vector<128x128xf32>
    %31 = arith.addf %26, %30 : vector<128x128xf32>
    %cst_28 = arith.constant 0.000000e+00 : f32
    %32 = vector.broadcast %cst_28 : f32 to vector<128x128xf32>
    %33 = arith.cmpf oge, %31, %32 : vector<128x128xf32>
    %c1 = arith.constant 1 : index
    %c0_29 = arith.constant 0 : index
    %34 = vector.load %arg4[%c1, %c0_29] : memref<2x128xf32, #tpu.memory_space<vmem>>, vector<1x128xf32>
    %35 = vector.shape_cast %34 : vector<1x128xf32> to vector<128xf32>
    %36 = vector.shape_cast %35 : vector<128xf32> to vector<1x128xf32>
    %37 = vector.broadcast %36 : vector<1x128xf32> to vector<128x128xf32>
    %38 = arith.mulf %37, %31 : vector<128x128xf32>
    %39 = arith.select %33, %31, %38 : vector<128x128xi1>, vector<128x128xf32>
    %40 = vector.shape_cast %39 : vector<128x128xf32> to vector<1x8x16x128xf32>
    %c0_30 = arith.constant 0 : index
    %c0_31 = arith.constant 0 : index
    %c0_32 = arith.constant 0 : index
    %c0_33 = arith.constant 0 : index
    %41 = vector.load %arg5[%c0_30, %c0_31, %c0_32, %c0_33] : memref<1x8x16x128xf32, #tpu.memory_space<vmem>>, vector<1x8x16x128xf32>
    tpu.vector_store %arg5[%c0_30, %c0_31, %c0_32, %c0_33], %40 {strides = array<i32>} : memref<1x8x16x128xf32, #tpu.memory_space<vmem>>, vector<1x8x16x128xf32>,
    return
  }
  func.func @transform_0(%arg0: i32, %arg1: i32) -> (i32, i32, i32, i32) {
    %c0_i32 = arith.constant 0 : i32
    %c0_i32_0 = arith.constant 0 : i32
    %c0_i32_1 = arith.constant 0 : i32
    %c0_i32_2 = arith.constant 0 : i32
    return %arg0, %c0_i32, %c0_i32_0, %c0_i32_1 : i32, i32, i32, i32
  }
  func.func @transform_1(%arg0: i32, %arg1: i32) -> (i32, i32) {
    %c0_i32 = arith.constant 0 : i32
    %c0_i32_0 = arith.constant 0 : i32
    %c0_i32_1 = arith.constant 0 : i32
    return %c0_i32, %c0_i32_0 : i32, i32
  }
  func.func @transform_2(%arg0: i32, %arg1: i32) -> (i32, i32) {
    %c0_i32 = arith.constant 0 : i32
    %c0_i32_0 = arith.constant 0 : i32
    %c0_i32_1 = arith.constant 0 : i32
    return %c0_i32, %c0_i32_0 : i32, i32
  }
  func.func @transform_3(%arg0: i32, %arg1: i32) -> (i32, i32, i32, i32) {
    %c0_i32 = arith.constant 0 : i32
    %c0_i32_0 = arith.constant 0 : i32
    %c0_i32_1 = arith.constant 0 : i32
    return %arg0, %arg1, %c0_i32, %c0_i32_0 : i32, i32, i32, i32
  }
}

</mosaic_0001>

<bundles_post_ra>
// kernel: tpu_custom_call.1
= control target key start
LH: loop header
LB: loop body
LE: loop exit
PB: predicated region body
PF: predicated region fallthrough
CT: control target
= control target key end

     0   :  { %8 = vsyncpa [#allocation4], 0  ;;  %s2544_s0 = inlined_call_operand.vmem [shape: f32[2,18,18,4], index: 0, kind: input, shape index: {}]   ;;  %s2545_s1 = inlined_call_operand.vmem [shape: f32[36,128], index: 1, kind: input, shape index: {}]   ;;  %s2546_s2 = inlined_call_operand.vmem [shape: f32[2,128], index: 2, kind: input, shape index: {}]   ;;  %s2547_s3 = inlined_call_operand.hbm [shape: f32[2,16,16,128], index: 3, kind: output, shape index: {}]  }
   0x1   :  { %10 = vsyncpa [#allocation4 + $0x1], 0  ;;  %s1682_s12 = smov 0   ;;  %s1684_s13 = smov 0  }
   0x2   :  { %s1686_s14 = smov 0   ;;  %s1688_s15 = smov 0  }
   0x3   :  { %s1690_s16 = smov 0   ;;  %s1692_s17 = smov 0  }
   0x4   :  { %s1694_s18 = smov 0   ;;  %s1696_s19 = smov 0  }
   0x5 LB: > { %s1376_s20 = sadd.s32 4294967295, %s1650_s19   ;;  %s1377_s21 = sadd.s32 4294967294, %s1650_s19   ;;  %s1650_s19 = sphi %s1696_s19, %s16_s19   ;;  %s1646_s18 = sphi %s1694_s18, %s2584_s18   ;;  %s1642_s17 = sphi %s1692_s17, %s2583_s17   ;;  %s1638_s16 = sphi %s1690_s16, %s2582_s16   ;;  %s1634_s15 = sphi %s1688_s15, %s2581_s15   ;;  %s1630_s14 = sphi %s1686_s14, %s2580_s14   ;;  %s1626_s13 = sphi %s1684_s13, %s2579_s13   ;;  %s1622_s12 = sphi %s1682_s12, %s2578_s12  }
   0x6   : > { %s25_s22 = sadd.s32 1, %s1642_s17  ;;  %s28_s23 = sadd.s32 1, %s1646_s18 }
   0x7   : > { %p26_p0 = scmp.ge.s32.totalorder %s25_s22, 2  ;;  %p115_p1 = scmp.ne.s32.totalorder %s1630_s14, %s1626_s13 }
   0x8   : > { %p116_p2 = scmp.eq.s32.totalorder %s1376_s20, 3  ;;  %p121_p5 = scmp.ne.s32.totalorder %s1626_s13, %s1622_s12 }
   0x9   : > { %s2586_s22 = smov (%p26_p0, %s25_s22), 0  ;;  %s2588_s23 = smov (!%p26_p0, %s28_s23), %s1646_s18 }
   0xa   : > { %s101_s24 = ssub.s32 %s1642_s17, %s2586_s22  ;;  %p1733_p3 = por %p116_p2, %p115_p1 }
   0xb   : > { %p30_p4 = scmp.ge.s32.totalorder %s2588_s23, 2  ;;  %p122_p6 = scmp.eq.s32.totalorder %s1377_s21, 3 }
   0xc   : > { %p1380_p7 = scmp.ge.s32.totalorder %s1650_s19, 1  ;;  %p154_p9 = scmp.lt.s32.totalorder %s1650_s19, 5 }
   0xd   : > { %s2590_s23 = smov (%p30_p4, %s2588_s23), 0  ;;  %p1742_p8 = por %p122_p6, %p121_p5 }
   0xe   : > { %s100_s27 = ssub.s32 %s1646_s18, %s2590_s23  ;;  %s105_s28 = sadd.s32 1, %s1630_s14 }
   0xf   : > { %s102_s29 = sor.u32 %s101_s24, %s100_s27  ;;  %p155_p10 = pnand %p1380_p7, %p154_p9 }
  0x10   : > { %p103_p11 = scmp.eq.s32.totalorder %s102_s29, 0  ;;  %p178_p12 = scmp.lt.s32.totalorder (!%p155_p10), %s1638_s16, 1 }
  0x11   : > { %158 = sbr.rel (%p155_p10) target bundleno = 715 (0x2cb), region = 32  ;;  %s1652_s11 = smov (!%p155_p10), 4  }
  0x12   : > { %s1751_s30 = scalar_select %p103_p11, %s1630_s14, %s105_s28  }
  0x13   : > { %s1384_s5 = smul.u32 (!%p155_p10), 192, %s1634_s15  ;;  %s1653_s20 = smov (!%p155_p10), 8  }
  0x14   : > { %s1654_s21 = smov (!%p155_p10), 12   ;;  %s1655_s24 = smov (!%p155_p10), 16  }
  0x15   : > { %s1656_s27 = smov (!%p155_p10), 20   ;;  %s1657_s28 = smov (!%p155_p10), 24  }
  0x16   : > { %s179_s4 = scalar_select %p178_p12, %s1638_s16, 1  ;;  %vm217_vm0 = vcmask 31744   ;;  %vm334_vm1 = vcmask 57376   ;;  %vm330_vm2 = vcmask 64545   ;;  %vm332_vm3 = vcmask 64544   ;;  %v1007_v47 = vld [vmem:[%s2545_s1 + $0x18] sm:$0xff] }
  0x17   : > { %s1658_s29 = smov 28   ;;  %v1008_v44 = vld [vmem:[%s2545_s1 + $0x20] sm:$0xf]  ;;  %vm1063_vm4 = vcmask 1043456   ;;  %v1006_v48 = vld [vmem:[%s2545_s1 + $0x10] sm:$0xff]  ;;  %v1005_v51 = vld [vmem:[%s2545_s1 + $0x8] sm:$0xff] }
  0x18   : > { %s1477_s6 = smul.u32 432, %s179_s4  ;;  %s1659_s4 = smov 32   ;;  %1433 = vmatprep.subr.msk.mxu0 %vm1063_vm4, %v1008_v44  ;;  %1467 = vmatprep.subr.msk.mxu1 %vm1063_vm4, %v1008_v44  ;;  %vm431_vm5 = vcmask 97344   ;;  %vm429_vm6 = vcmask 97346   ;;  %v1004_v52 = vld [vmem:[%s2545_s1] sm:$0xff]  ;;  %vm433_vm7 = vcmask 91200  }
  0x19   : > { %1434 = vmatpush3.msk.msra.mxu0 %vm1063_vm4, %v1008_v44  ;;  %1472 = vmatpush3.msk.msra.mxu1 %vm1063_vm4, %v1008_v44  ;;  %vm506_vm8 = vcmask 130144   ;;  %vm2552_vm9 = vcmask 162944   ;;  %vm2551_vm10 = vcmask 162945   ;;  %vm2550_vm11 = vcmask 155776  }
  0x1a   : > { %s182_s9 = scalar_lea.vmem %s2544_s0, %s1477_s6  ;;  %1435 = vmatprep.subr.mxu0 %v1007_v47  ;;  %1468 = vmatprep.subr.mxu1 %v1007_v47  ;;  %vm697_vm12 = vcmask 195744   ;;  %vm695_vm13 = vcmask 195746   ;;  %vm699_vm14 = vcmask 189600   ;;  %vm772_vm15 = vcmask 228544  }
  0x1b   : > { %s1759_s10 = scalar_lea.vmem %s182_s9, %s1384_s5  ;;  %1436 = vmatpush3.msra.mxu0 %v1007_v47  ;;  %1473 = vmatpush3.msra.mxu1 %v1007_v47  ;;  %vm2549_vm4 = vcmask 294144   ;;  %s1411_s9 = sshll.u32 %s1634_s15, 4 }
  0x1c   : > { %v1762_v0 = vld [vmem:[%s1759_s10 + $0x10] sm:$0x3]  ;;  %v1765_v1 = vld [vmem:[%s1759_s10] sm:$0xff]  ;;  %v1768_v2 = vld [vmem:[%s1759_s10 + $0x18] sm:$0xff]  ;;  %1437 = vmatprep.subr.mxu0 %v1006_v48  ;;  %1469 = vmatprep.subr.mxu1 %v1006_v48 }
  0x1d   : > { %262 = vrot.lane.b32.xlu1 %v1762_v0, %s1652_s11  ;;  %258 = vrot.lane.b32.xlu0 %v1765_v1, %s1652_s11  ;;  %v188_v3 = vld [vmem:[%s1759_s10 + $0x8] sm:$0xff]  ;;  %218 = vst.msk [vmem:[#allocation2] sm:$0xff] %vm217_vm0, %v1765_v1  ;;  %220 = vst.msk [vmem:[#allocation2 + $0x10] sm:$0xff] %vm217_vm0, %v1768_v2  ;;  %v1780_v4 = vld [vmem:[%s1759_s10 + $0x20] sm:$0xff] }
  0x1e   : > { %v1783_v5 = vld [vmem:[%s1759_s10 + $0x38] sm:$0xff]  ;;  %v1786_v6 = vld [vmem:[%s1759_s10 + $0x30] sm:$0xff]  ;;  %219 = vst.msk [vmem:[#allocation2 + $0x8] sm:$0xff] %vm217_vm0, %v188_v3  ;;  %v1790_v7 = vld [vmem:[%s1759_s10 + $0x48] sm:$0xff]  ;;  %1438 = vmatpush3.msra.mxu0 %v1006_v48  ;;  %1474 = vmatpush3.msra.mxu1 %v1006_v48 }
  0x1f   : > { %221 = vst.msk [vmem:[#allocation2 + $0x18] sm:$0xff] %vm217_vm0, %v1780_v4  ;;  %222 = vst.msk [vmem:[#allocation2 + $0x20] sm:$0xff] %vm217_vm0, %v1786_v6  ;;  %v1799_v8 = vld [vmem:[%s1759_s10 + $0x50] sm:$0xff]  ;;  %v1802_v9 = vld [vmem:[%s1759_s10 + $0x68] sm:$0xff]  ;;  %1439 = vmatprep.subr.mxu0 %v1005_v51  ;;  %1470 = vmatprep.subr.mxu1 %v1005_v51 }
  0x20   : > { %223 = vst.msk [vmem:[#allocation2 + $0x28] sm:$0xff] %vm217_vm0, %v1783_v5  ;;  %v1805_v10 = vld [vmem:[%s1759_s10 + $0x60] sm:$0xff]  ;;  %224 = vst.msk [vmem:[#allocation2 + $0x30] sm:$0xff] %vm217_vm0, %v1790_v7  ;;  %v1813_v11 = vld [vmem:[%s1759_s10 + $0x78] sm:$0xff]  ;;  %1440 = vmatpush3.msra.mxu0 %v1005_v51  ;;  %1475 = vmatpush3.msra.mxu1 %v1005_v51 }
  0x21   : > { %264 = vrot.lane.b32.xlu1 %v1768_v2, %s1652_s11  ;;  %260 = vrot.lane.b32.xlu0 %v188_v3, %s1652_s11  ;;  %225 = vst.msk [vmem:[#allocation2 + $0x38] sm:$0xff] %vm217_vm0, %v1799_v8  ;;  %226 = vst.msk [vmem:[#allocation2 + $0x40] sm:$0xff] %vm217_vm0, %v1805_v10  ;;  %v1822_v12 = vld [vmem:[%s1759_s10 + $0x28] sm:$0x3]  ;;  %v1825_v13 = vld [vmem:[%s1759_s10 + $0x80] sm:$0xff] }
  0x22   : > { %227 = vst.msk [vmem:[#allocation2 + $0x48] sm:$0xff] %vm217_vm0, %v1802_v9  ;;  %v1828_v14 = vld [vmem:[%s1759_s10 + $0x98] sm:$0xff]  ;;  %228 = vst.msk [vmem:[#allocation2 + $0x50] sm:$0xff] %vm217_vm0, %v1813_v11  ;;  %v1833_v15 = vld [vmem:[%s1759_s10 + $0x90] sm:$0xff]  ;;  %1441 = vmatprep.subr.mxu0 %v1004_v52  ;;  %1471 = vmatprep.subr.mxu1 %v1004_v52 }
  0x23   : > { %v1836_v16 = vld [vmem:[%s1759_s10 + $0xa8] sm:$0xff]  ;;  %229 = vst.msk [vmem:[#allocation2 + $0x58] sm:$0xff] %vm217_vm0, %v1825_v13  ;;  %231 = vst.msk [vmem:[#allocation2 + $0x68] sm:$0xff] %vm217_vm0, %v1828_v14  ;;  %v1843_v17 = vld [vmem:[%s1759_s10 + $0xb0] sm:$0xff]  ;;  %1442 = vmatpush3.msra.mxu0 %v1004_v52  ;;  %1476 = vmatpush3.msra.mxu1 %v1004_v52 }
  0x24   : > { %230 = vst.msk [vmem:[#allocation2 + $0x60] sm:$0xff] %vm217_vm0, %v1833_v15  ;;  %232 = vst.msk [vmem:[#allocation2 + $0x70] sm:$0xff] %vm217_vm0, %v1836_v16  ;;  %v1860_v18 = vld [vmem:[%s1759_s10 + $0x40] sm:$0x3]  ;;  %v1867_v19 = vld [vmem:[%s1759_s10 + $0x58] sm:$0x3] }
  0x25   : > { %268 = vrot.lane.b32.xlu1 %v1822_v12, %s1652_s11  ;;  %266 = vrot.lane.b32.xlu0 %v1780_v4, %s1652_s11  ;;  %233 = vst.msk [vmem:[#allocation2 + $0x78] sm:$0xff] %vm217_vm0, %v1843_v17  ;;  %v1878_v20 = vld [vmem:[%s1759_s10 + $0x70] sm:$0x3]  ;;  %v1885_v21 = vld [vmem:[%s1759_s10 + $0x88] sm:$0x3]  ;;  %vm862_vm0 = vcmask 261345  }
  0x26   : > { %v1896_v22 = vld [vmem:[%s1759_s10 + $0xa0] sm:$0x3]  ;;  %v1903_v23 = vld [vmem:[%s1759_s10 + $0xb8] sm:$0x3] }
  0x29   : > { %272 = vrot.lane.b32.xlu1 %v1783_v5, %s1652_s11  ;;  %270 = vrot.lane.b32.xlu0 %v1786_v6, %s1652_s11 }
  0x2d   : > { %276 = vrot.lane.b32.xlu1 %v1790_v7, %s1652_s11  ;;  %274 = vrot.lane.b32.xlu0 %v1860_v18, %s1652_s11 }
  0x31   : > { %280 = vrot.lane.b32.xlu1 %v1867_v19, %s1652_s11  ;;  %278 = vrot.lane.b32.xlu0 %v1799_v8, %s1652_s11 }
  0x35   : > { %284 = vrot.lane.b32.xlu1 %v1802_v9, %s1652_s11  ;;  %282 = vrot.lane.b32.xlu0 %v1805_v10, %s1652_s11 }
  0x39   : > { %288 = vrot.lane.b32.xlu1 %v1813_v11, %s1652_s11  ;;  %286 = vrot.lane.b32.xlu0 %v1878_v20, %s1652_s11 }
  0x3d   : > { %292 = vrot.lane.b32.xlu1 %v1885_v21, %s1652_s11  ;;  %290 = vrot.lane.b32.xlu0 %v1825_v13, %s1652_s11 }
  0x41   : > { %296 = vrot.lane.b32.xlu1 %v1828_v14, %s1652_s11  ;;  %294 = vrot.lane.b32.xlu0 %v1833_v15, %s1652_s11 }
  0x45   : > { %300 = vrot.lane.b32.xlu1 %v1836_v16, %s1652_s11  ;;  %298 = vrot.lane.b32.xlu0 %v1896_v22, %s1652_s11 }
  0x49   : > { %304 = vrot.lane.b32.xlu1 %v1903_v23, %s1652_s11  ;;  %302 = vrot.lane.b32.xlu0 %v1843_v17, %s1652_s11  ;;  %s1407_s11 = sshll.u32 %s1638_s16, 5 }
  0x4a   : > { %s1295_s5 = sadd.s32 %s1411_s9, %s1407_s11 }
  0x4b   : > { %s1408_s15 = sshll.u32 %s1295_s5, 7 }
  0x4c   : > { %s2484_s8 = scalar_lea.hbm %s2547_s3, %s1408_s15 }
  0x4d   : > { %359 = vrot.lane.b32.xlu1 %v188_v3, %s1653_s20  ;;  %357 = vrot.lane.b32.xlu0 %v1765_v1, %s1653_s20 }
  0x51   : > { %363 = vrot.lane.b32.xlu1 %v1768_v2, %s1653_s20  ;;  %361 = vrot.lane.b32.xlu0 %v1762_v0, %s1653_s20 }
  0x55   : > { %367 = vrot.lane.b32.xlu1 %v1822_v12, %s1653_s20  ;;  %365 = vrot.lane.b32.xlu0 %v1780_v4, %s1653_s20 }
  0x59   : > { %371 = vrot.lane.b32.xlu1 %v1783_v5, %s1653_s20  ;;  %369 = vrot.lane.b32.xlu0 %v1786_v6, %s1653_s20 }
  0x5d   : > { %381 = vrot.lane.b32.xlu1 %v1805_v10, %s1653_s20  ;;  %373 = vrot.lane.b32.xlu0 %v1860_v18, %s1653_s20 }
  0x61   : > { %385 = vrot.lane.b32.xlu1 %v1878_v20, %s1653_s20  ;;  %383 = vrot.lane.b32.xlu0 %v1802_v9, %s1653_s20 }
  0x65   : > { %460 = vrot.lane.b32.xlu1 %v1780_v4, %s1654_s21  ;;  %458 = vrot.lane.b32.xlu0 %v1768_v2, %s1654_s21 }
  0x69   : > { %476 = vrot.lane.b32.xlu1 %v1825_v13, %s1654_s21  ;;  %474 = vrot.lane.b32.xlu0 %v1813_v11, %s1654_s21 }
  0x6d   : > { %526 = vrot.lane.b32.xlu1 %v1780_v4, %s1655_s24  ;;  %524 = vrot.lane.b32.xlu0 %v1768_v2, %s1655_s24 }
  0x71   : > { %548 = vrot.lane.b32.xlu1 %v1813_v11, %s1655_s24  ;;  %528 = vrot.lane.b32.xlu0 %v1822_v12, %s1655_s24 }
  0x75   : > { %552 = vrot.lane.b32.xlu1 %v1885_v21, %s1655_s24  ;;  %550 = vrot.lane.b32.xlu0 %v1825_v13, %s1655_s24 }
  0x79   : > { %625 = vrot.lane.b32.xlu1 %v1780_v4, %s1656_s27  ;;  %623 = vrot.lane.b32.xlu0 %v1768_v2, %s1656_s27 }
  0x7d   : > { %647 = vrot.lane.b32.xlu1 %v1813_v11, %s1656_s27  ;;  %627 = vrot.lane.b32.xlu0 %v1822_v12, %s1656_s27 }
  0x81   : > { %651 = vrot.lane.b32.xlu1 %v1885_v21, %s1656_s27  ;;  %649 = vrot.lane.b32.xlu0 %v1825_v13, %s1656_s27 }
  0x85   : > { %389 = vrot.lane.b32.xlu1 %v1825_v13, %s1653_s20  ;;  %387 = vrot.lane.b32.xlu0 %v1813_v11, %s1653_s20 }
  0x89   : > { %724 = vrot.lane.b32.xlu1 %v1786_v6, %s1657_s28  ;;  %391 = vrot.lane.b32.xlu0 %v1885_v21, %s1653_s20 }
  0x8d   : > { %740 = vrot.lane.b32.xlu1 %v1833_v15, %s1657_s28  ;;  %726 = vrot.lane.b32.xlu0 %v1783_v5, %s1657_s28 }
  0x8f   : > { %v263_v24 = vpop.permute.xlu1 %262  ;;  %v259_v25 = vpop.permute.xlu0 %258 }
  0x90   : > { %335 = vst.msk [vmem:[#allocation2 + $0xf] sm:$0x1] %vm334_vm1, %v263_v24 }
  0x91   : > { %331 = vst.msk [vmem:[#allocation2 - $0x1] sm:$0xfe] %vm330_vm2, %v259_v25  ;;  %462 = vrot.lane.b32.xlu1 %v1786_v6, %s1654_s21  ;;  %742 = vrot.lane.b32.xlu0 %v1828_v14, %s1657_s28 }
  0x93   : > { %v265_v26 = vpop.permute.xlu1 %264  ;;  %v261_v27 = vpop.permute.xlu0 %260 }
  0x94   : > { %336 = vst.msk [vmem:[#allocation2 + $0xf] sm:$0xfe] %vm330_vm2, %v265_v26 }
  0x95   : > { %333 = vst.msk [vmem:[#allocation2 + $0x7] sm:$0xff] %vm332_vm3, %v261_v27  ;;  %478 = vrot.lane.b32.xlu1 %v1833_v15, %s1654_s21  ;;  %464 = vrot.lane.b32.xlu0 %v1783_v5, %s1654_s21 }
  0x97   : > { %v269_v28 = vpop.permute.xlu1 %268  ;;  %v267_v29 = vpop.permute.xlu0 %266 }
  0x98   : > { %338 = vst.msk [vmem:[#allocation2 + $0x1f] sm:$0x1] %vm334_vm1, %v269_v28 }
  0x99   : > { %337 = vst.msk [vmem:[#allocation2 + $0x17] sm:$0xff] %vm332_vm3, %v267_v29  ;;  %790 = vrot.lane.b32.xlu1 %v1786_v6, %s1658_s29  ;;  %480 = vrot.lane.b32.xlu0 %v1828_v14, %s1654_s21 }
  0x9b   : > { %v273_v30 = vpop.permute.xlu1 %272  ;;  %v271_v31 = vpop.permute.xlu0 %270 }
  0x9c   : > { %340 = vst.msk [vmem:[#allocation2 + $0x27] sm:$0xff] %vm332_vm3, %v273_v30 }
  0x9d   : > { %339 = vst.msk [vmem:[#allocation2 + $0x1f] sm:$0xfe] %vm330_vm2, %v271_v31  ;;  %814 = vrot.lane.b32.xlu1 %v1833_v15, %s1658_s29  ;;  %792 = vrot.lane.b32.xlu0 %v1783_v5, %s1658_s29 }
  0x9f   : > { %v277_v32 = vpop.permute.xlu1 %276  ;;  %v275_v33 = vpop.permute.xlu0 %274 }
  0xa0   : > { %342 = vst.msk [vmem:[#allocation2 + $0x2f] sm:$0xfe] %vm330_vm2, %v277_v32 }
  0xa1   : > { %341 = vst.msk [vmem:[#allocation2 + $0x2f] sm:$0x1] %vm334_vm1, %v275_v33  ;;  %530 = vrot.lane.b32.xlu1 %v1786_v6, %s1655_s24  ;;  %816 = vrot.lane.b32.xlu0 %v1828_v14, %s1658_s29 }
  0xa3   : > { %v281_v34 = vpop.permute.xlu1 %280  ;;  %v279_v35 = vpop.permute.xlu0 %278 }
  0xa4   : > { %344 = vst.msk [vmem:[#allocation2 + $0x3f] sm:$0x1] %vm334_vm1, %v281_v34 }
  0xa5   : > { %343 = vst.msk [vmem:[#allocation2 + $0x37] sm:$0xff] %vm332_vm3, %v279_v35  ;;  %534 = vrot.lane.b32.xlu1 %v1860_v18, %s1655_s24  ;;  %532 = vrot.lane.b32.xlu0 %v1783_v5, %s1655_s24 }
  0xa7   : > { %v285_v36 = vpop.permute.xlu1 %284  ;;  %v283_v37 = vpop.permute.xlu0 %282 }
  0xa8   : > { %346 = vst.msk [vmem:[#allocation2 + $0x47] sm:$0xff] %vm332_vm3, %v285_v36 }
  0xa9   : > { %345 = vst.msk [vmem:[#allocation2 + $0x3f] sm:$0xfe] %vm330_vm2, %v283_v37  ;;  %556 = vrot.lane.b32.xlu1 %v1828_v14, %s1655_s24  ;;  %554 = vrot.lane.b32.xlu0 %v1833_v15, %s1655_s24 }
  0xab   : > { %v289_v38 = vpop.permute.xlu1 %288  ;;  %v287_v39 = vpop.permute.xlu0 %286 }
  0xac   : > { %348 = vst.msk [vmem:[#allocation2 + $0x4f] sm:$0xfe] %vm330_vm2, %v289_v38 }
  0xad   : > { %347 = vst.msk [vmem:[#allocation2 + $0x4f] sm:$0x1] %vm334_vm1, %v287_v39  ;;  %794 = vrot.lane.b32.xlu1 %v1860_v18, %s1658_s29  ;;  %558 = vrot.lane.b32.xlu0 %v1896_v22, %s1655_s24 }
  0xaf   : > { %v293_v40 = vpop.permute.xlu1 %292  ;;  %v291_v41 = vpop.permute.xlu0 %290 }
  0xb0   : > { %350 = vst.msk [vmem:[#allocation2 + $0x5f] sm:$0x1] %vm334_vm1, %v293_v40 }
  0xb1   : > { %349 = vst.msk [vmem:[#allocation2 + $0x57] sm:$0xff] %vm332_vm3, %v291_v41  ;;  %889 = vrot.lane.b32.xlu1 %v1786_v6, %s1659_s4  ;;  %818 = vrot.lane.b32.xlu0 %v1896_v22, %s1658_s29 }
  0xb3   : > { %v297_v42 = vpop.permute.xlu1 %296  ;;  %v295_v43 = vpop.permute.xlu0 %294 }
  0xb4   : > { %352 = vst.msk [vmem:[#allocation2 + $0x67] sm:$0xff] %vm332_vm3, %v297_v42 }
  0xb5   : > { %351 = vst.msk [vmem:[#allocation2 + $0x5f] sm:$0xfe] %vm330_vm2, %v295_v43  ;;  %913 = vrot.lane.b32.xlu1 %v1833_v15, %s1659_s4  ;;  %891 = vrot.lane.b32.xlu0 %v1783_v5, %s1659_s4 }
  0xb7   : > { %v301_v45 = vpop.permute.xlu1 %300  ;;  %v299_v46 = vpop.permute.xlu0 %298 }
  0xb8   : > { %354 = vst.msk [vmem:[#allocation2 + $0x6f] sm:$0xfe] %vm330_vm2, %v301_v45  ;;  %vm2553_vm2 = vcmask 254176  }
  0xb9   : > { %353 = vst.msk [vmem:[#allocation2 + $0x6f] sm:$0x1] %vm334_vm1, %v299_v46  ;;  %629 = vrot.lane.b32.xlu1 %v1786_v6, %s1656_s27  ;;  %915 = vrot.lane.b32.xlu0 %v1828_v14, %s1659_s4 }
  0xbb   : > { %v305_v49 = vpop.permute.xlu1 %304  ;;  %v303_v50 = vpop.permute.xlu0 %302 }
  0xbc   : > { %356 = vst.msk [vmem:[#allocation2 + $0x7f] sm:$0x1] %vm334_vm1, %v305_v49  ;;  %vm864_vm1 = vcmask 261344  }
  0xbd   : > { %355 = vst.msk [vmem:[#allocation2 + $0x77] sm:$0xff] %vm332_vm3, %v303_v50  ;;  %633 = vrot.lane.b32.xlu1 %v1860_v18, %s1656_s27  ;;  %631 = vrot.lane.b32.xlu0 %v1783_v5, %s1656_s27  ;;  %vm2548_vm3 = vcmask 294146  }
  0xbf   : > { %v360_v53 = vpop.permute.xlu1 %359  ;;  %v358_v54 = vpop.permute.xlu0 %357 }
  0xc0   : > { %432 = vst.msk [vmem:[#allocation2 + $0x6] sm:$0xff] %vm431_vm5, %v360_v53 }
  0xc1   : > { %430 = vst.msk [vmem:[#allocation2 - $0x2] sm:$0xfc] %vm429_vm6, %v358_v54  ;;  %655 = vrot.lane.b32.xlu1 %v1828_v14, %s1656_s27  ;;  %653 = vrot.lane.b32.xlu0 %v1833_v15, %s1656_s27 }
  0xc3   : > { %v364_v55 = vpop.permute.xlu1 %363  ;;  %v362_v56 = vpop.permute.xlu0 %361 }
  0xc4   : > { %435 = vst.msk [vmem:[#allocation2 + $0xe] sm:$0xfc] %vm429_vm6, %v364_v55 }
  0xc5   : > { %434 = vst.msk [vmem:[#allocation2 + $0xe] sm:$0x3] %vm433_vm7, %v362_v56  ;;  %893 = vrot.lane.b32.xlu1 %v1860_v18, %s1659_s4  ;;  %657 = vrot.lane.b32.xlu0 %v1896_v22, %s1656_s27 }
  0xc7   : > { %v368_v57 = vpop.permute.xlu1 %367  ;;  %v366_v58 = vpop.permute.xlu0 %365 }
  0xc8   : > { %437 = vst.msk [vmem:[#allocation2 + $0x1e] sm:$0x3] %vm433_vm7, %v368_v57 }
  0xc9   : > { %436 = vst.msk [vmem:[#allocation2 + $0x16] sm:$0xff] %vm431_vm5, %v366_v58  ;;  %393 = vrot.lane.b32.xlu1 %v1833_v15, %s1653_s20  ;;  %917 = vrot.lane.b32.xlu0 %v1896_v22, %s1659_s4 }
  0xcb   : > { %v372_v59 = vpop.permute.xlu1 %371  ;;  %v370_v60 = vpop.permute.xlu0 %369 }
  0xcc   : > { %439 = vst.msk [vmem:[#allocation2 + $0x26] sm:$0xff] %vm431_vm5, %v372_v59 }
  0xcd   : > { %438 = vst.msk [vmem:[#allocation2 + $0x1e] sm:$0xfc] %vm429_vm6, %v370_v60  ;;  %397 = vrot.lane.b32.xlu1 %v1896_v22, %s1653_s20  ;;  %395 = vrot.lane.b32.xlu0 %v1828_v14, %s1653_s20 }
  0xcf   : > { %v382_v61 = vpop.permute.xlu1 %381  ;;  %v374_v62 = vpop.permute.xlu0 %373 }
  0xd0   : > { %444 = vst.msk [vmem:[#allocation2 + $0x3e] sm:$0xfc] %vm429_vm6, %v382_v61  ;;  %v213_v61 = vld [vmem:[%s1759_s10 + $0xd0] sm:$0x3] }
  0xd1   : > { %440 = vst.msk [vmem:[#allocation2 + $0x2e] sm:$0x3] %vm433_vm7, %v374_v62  ;;  %730 = vrot.lane.b32.xlu1 %v1799_v8, %s1657_s28  ;;  %728 = vrot.lane.b32.xlu0 %v1790_v7, %s1657_s28 }
  0xd3   : > { %v386_v63 = vpop.permute.xlu1 %385  ;;  %v384_v0 = vpop.permute.xlu0 %383 }
  0xd4   : > { %446 = vst.msk [vmem:[#allocation2 + $0x4e] sm:$0x3] %vm433_vm7, %v386_v63 }
  0xd5   : > { %445 = vst.msk [vmem:[#allocation2 + $0x46] sm:$0xff] %vm431_vm5, %v384_v0  ;;  %746 = vrot.lane.b32.xlu1 %v1843_v17, %s1657_s28  ;;  %744 = vrot.lane.b32.xlu0 %v1836_v16, %s1657_s28 }
  0xd7   : > { %v461_v1 = vpop.permute.xlu1 %460  ;;  %v459_v2 = vpop.permute.xlu0 %458 }
  0xd8   : > { %508 = vst.msk [vmem:[#allocation2 + $0x8] sm:$0xff] %vm506_vm8, %v461_v1  ;;  %507 = vst.msk [vmem:[#allocation2] sm:$0xff] %vm506_vm8, %v459_v2 }
  0xd9   : > { %468 = vrot.lane.b32.xlu1 %v1799_v8, %s1654_s21  ;;  %466 = vrot.lane.b32.xlu0 %v1790_v7, %s1654_s21 }
  0xdb   : > { %v477_v3 = vpop.permute.xlu1 %476  ;;  %v475_v4 = vpop.permute.xlu0 %474 }
  0xdc   : > { %516 = vst.msk [vmem:[#allocation2 + $0x48] sm:$0xff] %vm506_vm8, %v477_v3  ;;  %515 = vst.msk [vmem:[#allocation2 + $0x40] sm:$0xff] %vm506_vm8, %v475_v4 }
  0xdd   : > { %484 = vrot.lane.b32.xlu1 %v1843_v17, %s1654_s21  ;;  %482 = vrot.lane.b32.xlu0 %v1836_v16, %s1654_s21 }
  0xdf   : > { %v527_v5 = vpop.permute.xlu1 %526  ;;  %v525_v6 = vpop.permute.xlu0 %524 }
  0xe0   : > { %599 = vst.msk [vmem:[#allocation2 + $0x7] sm:$0xff] %vm2552_vm9, %v527_v5 }
  0xe1   : > { %597 = vst.msk [vmem:[#allocation2 - $0x1] sm:$0xfe] %vm2551_vm10, %v525_v6  ;;  %798 = vrot.lane.b32.xlu1 %v1799_v8, %s1658_s29  ;;  %796 = vrot.lane.b32.xlu0 %v1790_v7, %s1658_s29 }
  0xe3   : > { %v549_v12 = vpop.permute.xlu1 %548  ;;  %v529_v14 = vpop.permute.xlu0 %528 }
  0xe4   : > { %611 = vst.msk [vmem:[#allocation2 + $0x3f] sm:$0xfe] %vm2551_vm10, %v549_v12 }
  0xe5   : > { %601 = vst.msk [vmem:[#allocation2 + $0xf] sm:$0x1] %vm2550_vm11, %v529_v14  ;;  %822 = vrot.lane.b32.xlu1 %v1843_v17, %s1658_s29  ;;  %820 = vrot.lane.b32.xlu0 %v1836_v16, %s1658_s29 }
  0xe7   : > { %v553_v15 = vpop.permute.xlu1 %552  ;;  %v551_v18 = vpop.permute.xlu0 %550 }
  0xe8   : > { %613 = vst.msk [vmem:[#allocation2 + $0x4f] sm:$0x1] %vm2550_vm11, %v553_v15 }
  0xe9   : > { %612 = vst.msk [vmem:[#allocation2 + $0x47] sm:$0xff] %vm2552_vm9, %v551_v18  ;;  %538 = vrot.lane.b32.xlu1 %v1799_v8, %s1655_s24  ;;  %536 = vrot.lane.b32.xlu0 %v1790_v7, %s1655_s24 }
  0xeb   : > { %v626_v22 = vpop.permute.xlu1 %625  ;;  %v624_v24 = vpop.permute.xlu0 %623 }
  0xec   : > { %698 = vst.msk [vmem:[#allocation2 + $0x6] sm:$0xff] %vm697_vm12, %v626_v22 }
  0xed   : > { %696 = vst.msk [vmem:[#allocation2 - $0x2] sm:$0xfc] %vm695_vm13, %v624_v24  ;;  %560 = vrot.lane.b32.xlu1 %v1836_v16, %s1655_s24  ;;  %540 = vrot.lane.b32.xlu0 %v1867_v19, %s1655_s24 }
  0xef   : > { %v648_v25 = vpop.permute.xlu1 %647  ;;  %v628_v26 = vpop.permute.xlu0 %627 }
  0xf0   : > { %710 = vst.msk [vmem:[#allocation2 + $0x3e] sm:$0xfc] %vm695_vm13, %v648_v25 }
  0xf1   : > { %700 = vst.msk [vmem:[#allocation2 + $0xe] sm:$0x3] %vm699_vm14, %v628_v26  ;;  %564 = vrot.lane.b32.xlu1 %v1903_v23, %s1655_s24  ;;  %562 = vrot.lane.b32.xlu0 %v1843_v17, %s1655_s24 }
  0xf3   : > { %v652_v27 = vpop.permute.xlu1 %651  ;;  %v650_v28 = vpop.permute.xlu0 %649 }
  0xf4   : > { %712 = vst.msk [vmem:[#allocation2 + $0x4e] sm:$0x3] %vm699_vm14, %v652_v27 }
  0xf5   : > { %711 = vst.msk [vmem:[#allocation2 + $0x46] sm:$0xff] %vm697_vm12, %v650_v28  ;;  %824 = vrot.lane.b32.xlu1 %v1903_v23, %s1658_s29  ;;  %800 = vrot.lane.b32.xlu0 %v1867_v19, %s1658_s29  ;;  %v215_v28 = vld [vmem:[%s1759_s10 + $0xe0] sm:$0xff] }
  0xf7   : > { %v390_v29 = vpop.permute.xlu1 %389  ;;  %v388_v30 = vpop.permute.xlu0 %387 }
  0xf8   : > { %448 = vst.msk [vmem:[#allocation2 + $0x56] sm:$0xff] %vm431_vm5, %v390_v29  ;;  %v214_v29 = vld [vmem:[%s1759_s10 + $0xd8] sm:$0xff] }
  0xf9   : > { %447 = vst.msk [vmem:[#allocation2 + $0x4e] sm:$0xfc] %vm429_vm6, %v388_v30  ;;  %897 = vrot.lane.b32.xlu1 %v1799_v8, %s1659_s4  ;;  %895 = vrot.lane.b32.xlu0 %v1790_v7, %s1659_s4 }
  0xfb   : > { %v725_v31 = vpop.permute.xlu1 %724  ;;  %v392_v32 = vpop.permute.xlu0 %391 }
  0xfc   : > { %773 = vst.msk [vmem:[#allocation2] sm:$0xff] %vm772_vm15, %v725_v31 }
  0xfd   : > { %449 = vst.msk [vmem:[#allocation2 + $0x5e] sm:$0x3] %vm433_vm7, %v392_v32  ;;  %921 = vrot.lane.b32.xlu1 %v1843_v17, %s1659_s4  ;;  %919 = vrot.lane.b32.xlu0 %v1836_v16, %s1659_s4 }
  0xff   : > { %v741_v33 = vpop.permute.xlu1 %740  ;;  %v727_v34 = vpop.permute.xlu0 %726 }
 0x100   : > { %781 = vst.msk [vmem:[#allocation2 + $0x40] sm:$0xff] %vm772_vm15, %v741_v33  ;;  %774 = vst.msk [vmem:[#allocation2 + $0x8] sm:$0xff] %vm772_vm15, %v727_v34 }
 0x101   : > { %637 = vrot.lane.b32.xlu1 %v1799_v8, %s1656_s27  ;;  %635 = vrot.lane.b32.xlu0 %v1790_v7, %s1656_s27 }
 0x103   : > { %v463_v35 = vpop.permute.xlu1 %462  ;;  %v743_v36 = vpop.permute.xlu0 %742 }
 0x104   : > { %509 = vst.msk [vmem:[#allocation2 + $0x10] sm:$0xff] %vm506_vm8, %v463_v35  ;;  %v216_v35 = vld [vmem:[%s1759_s10 + $0xe8] sm:$0x3] }
 0x105   : > { %782 = vst.msk [vmem:[#allocation2 + $0x48] sm:$0xff] %vm772_vm15, %v743_v36  ;;  %659 = vrot.lane.b32.xlu1 %v1836_v16, %s1656_s27  ;;  %639 = vrot.lane.b32.xlu0 %v1867_v19, %s1656_s27 }
 0x107   : > { %v479_v37 = vpop.permute.xlu1 %478  ;;  %v465_v38 = vpop.permute.xlu0 %464 }
 0x108   : > { %517 = vst.msk [vmem:[#allocation2 + $0x50] sm:$0xff] %vm506_vm8, %v479_v37  ;;  %510 = vst.msk [vmem:[#allocation2 + $0x18] sm:$0xff] %vm506_vm8, %v465_v38 }
 0x109   : > { %663 = vrot.lane.b32.xlu1 %v1903_v23, %s1656_s27  ;;  %661 = vrot.lane.b32.xlu0 %v1843_v17, %s1656_s27 }
 0x10b   : > { %v791_v39 = vpop.permute.xlu1 %790  ;;  %v481_v40 = vpop.permute.xlu0 %480 }
 0x10c   : > { %863 = vst.msk [vmem:[#allocation2 - $0x1] sm:$0xfe] %vm862_vm0, %v791_v39 }
 0x10d   : > { %518 = vst.msk [vmem:[#allocation2 + $0x58] sm:$0xff] %vm506_vm8, %v481_v40  ;;  %923 = vrot.lane.b32.xlu1 %v1903_v23, %s1659_s4  ;;  %899 = vrot.lane.b32.xlu0 %v1867_v19, %s1659_s4 }
 0x10f   : > { %v815_v41 = vpop.permute.xlu1 %814  ;;  %v793_v42 = vpop.permute.xlu0 %792 }
 0x110   : > { %877 = vst.msk [vmem:[#allocation2 + $0x3f] sm:$0xfe] %vm862_vm0, %v815_v41 }
 0x111   : > { %865 = vst.msk [vmem:[#allocation2 + $0x7] sm:$0xff] %vm864_vm1, %v793_v42  ;;  %377 = vrot.lane.b32.xlu1 %v1799_v8, %s1653_s20  ;;  %375 = vrot.lane.b32.xlu0 %v1790_v7, %s1653_s20 }
 0x113   : > { %v531_v43 = vpop.permute.xlu1 %530  ;;  %v817_v44 = vpop.permute.xlu0 %816 }
 0x114   : > { %602 = vst.msk [vmem:[#allocation2 + $0xf] sm:$0xfe] %vm2551_vm10, %v531_v43 }
 0x115   : > { %878 = vst.msk [vmem:[#allocation2 + $0x47] sm:$0xff] %vm864_vm1, %v817_v44  ;;  %399 = vrot.lane.b32.xlu1 %v1836_v16, %s1653_s20  ;;  %379 = vrot.lane.b32.xlu0 %v1867_v19, %s1653_s20  ;;  %v2208_v16 = vld [vmem:[%s1759_s10 + $0xc8] sm:$0xff]  ;;  %v2211_v19 = vld [vmem:[%s1759_s10 + $0xc0] sm:$0xff]  ;;  %s175_s10 = sand.u32 1, %s1626_s13  }
 0x117   : > { %v535_v45 = vpop.permute.xlu1 %534  ;;  %v533_v46 = vpop.permute.xlu0 %532 }
 0x118   : > { %604 = vst.msk [vmem:[#allocation2 + $0x1f] sm:$0x1] %vm2550_vm11, %v535_v45 }
 0x119   : > { %603 = vst.msk [vmem:[#allocation2 + $0x17] sm:$0xff] %vm2552_vm9, %v533_v46  ;;  %403 = vrot.lane.b32.xlu1 %v1903_v23, %s1653_s20  ;;  %401 = vrot.lane.b32.xlu0 %v1843_v17, %s1653_s20 }
 0x11b   : > { %v557_v7 = vpop.permute.xlu1 %556  ;;  %v555_v8 = vpop.permute.xlu0 %554 }
 0x11c   : > { %615 = vst.msk [vmem:[#allocation2 + $0x57] sm:$0xff] %vm2552_vm9, %v557_v7 }
 0x11d   : > { %614 = vst.msk [vmem:[#allocation2 + $0x4f] sm:$0xfe] %vm2551_vm10, %v555_v8  ;;  %734 = vrot.lane.b32.xlu1 %v1802_v9, %s1657_s28  ;;  %732 = vrot.lane.b32.xlu0 %v1805_v10, %s1657_s28 }
 0x11f   : > { %v795_v23 = vpop.permute.xlu1 %794  ;;  %v559_v47 = vpop.permute.xlu0 %558 }
 0x120   : > { %867 = vst.msk [vmem:[#allocation2 + $0xf] sm:$0x1] %vm2553_vm2, %v795_v23 }
 0x121   : > { %616 = vst.msk [vmem:[#allocation2 + $0x5f] sm:$0x1] %vm2550_vm11, %v559_v47  ;;  %750 = vrot.lane.b32.xlu1 %v2208_v16, %s1657_s28  ;;  %748 = vrot.lane.b32.xlu0 %v2211_v19, %s1657_s28 }
 0x123   : > { %v890_v17 = vpop.permute.xlu1 %889  ;;  %v819_v48 = vpop.permute.xlu0 %818 }
 0x124   : > { %962 = vst.msk [vmem:[#allocation2 - $0x2] sm:$0xfc] %vm2548_vm3, %v890_v17 }
 0x125   : > { %879 = vst.msk [vmem:[#allocation2 + $0x4f] sm:$0x1] %vm2553_vm2, %v819_v48  ;;  %472 = vrot.lane.b32.xlu1 %v1802_v9, %s1654_s21  ;;  %470 = vrot.lane.b32.xlu0 %v1805_v10, %s1654_s21 }
 0x127   : > { %v914_v49 = vpop.permute.xlu1 %913  ;;  %v892_v50 = vpop.permute.xlu0 %891 }
 0x128   : > { %976 = vst.msk [vmem:[#allocation2 + $0x3e] sm:$0xfc] %vm2548_vm3, %v914_v49  ;;  %vm1014_vm3 = vcmask 293888  }
 0x129   : > { %964 = vst.msk [vmem:[#allocation2 + $0x6] sm:$0xff] %vm2549_vm4, %v892_v50  ;;  %488 = vrot.lane.b32.xlu1 %v2208_v16, %s1654_s21  ;;  %486 = vrot.lane.b32.xlu0 %v2211_v19, %s1654_s21  ;;  %s2492_s21 = scalar_lea.sflag [#allocation4], %s175_s10 }
 0x12b   : > { %v630_v51 = vpop.permute.xlu1 %629  ;;  %v916_v52 = vpop.permute.xlu0 %915 }
 0x12c   : > { %701 = vst.msk [vmem:[#allocation2 + $0xe] sm:$0xfc] %vm695_vm13, %v630_v51 }
 0x12d   : > { %977 = vst.msk [vmem:[#allocation2 + $0x46] sm:$0xff] %vm2549_vm4, %v916_v52  ;;  %804 = vrot.lane.b32.xlu1 %v1802_v9, %s1658_s29  ;;  %802 = vrot.lane.b32.xlu0 %v1805_v10, %s1658_s29  ;;  %vm965_vm4 = vcmask 288000  }
 0x12f   : > { %v634_v53 = vpop.permute.xlu1 %633  ;;  %v632_v54 = vpop.permute.xlu0 %631 }
 0x130   : > { %v988_v55 = vld [vmem:[#allocation2] sm:$0xff]  ;;  %703 = vst.msk [vmem:[#allocation2 + $0x1e] sm:$0x3] %vm699_vm14, %v634_v53 }
 0x131   : > { %702 = vst.msk [vmem:[#allocation2 + $0x16] sm:$0xff] %vm697_vm12, %v632_v54  ;;  %1443 = vmatprep.mubr.msk.f32.mxu0 %vm1014_vm3, %v988_v55  ;;  %828 = vrot.lane.b32.xlu1 %v2208_v16, %s1658_s29 }
 0x132   : > { %826 = vrot.lane.b32.xlu0 %v2211_v19, %s1658_s29 }
 0x133   : > { %v656_v56 = vpop.permute.xlu1 %655  ;;  %v654_v57 = vpop.permute.xlu0 %653 }
 0x134   : > { %v996_v58 = vld [vmem:[#allocation2 + $0x40] sm:$0xff]  ;;  %714 = vst.msk [vmem:[#allocation2 + $0x56] sm:$0xff] %vm697_vm12, %v656_v56 }
 0x135   : > { %713 = vst.msk [vmem:[#allocation2 + $0x4e] sm:$0xfc] %vm695_vm13, %v654_v57  ;;  %1455 = vmatprep.mubr.msk.f32.mxu1 %vm1014_vm3, %v996_v58  ;;  %544 = vrot.lane.b32.xlu1 %v1802_v9, %s1655_s24 }
 0x136   : > { %542 = vrot.lane.b32.xlu0 %v1805_v10, %s1655_s24 }
 0x137   : > { %v894_v59 = vpop.permute.xlu1 %893  ;;  %v658_v60 = vpop.permute.xlu0 %657 }
 0x138   : > { %966 = vst.msk [vmem:[#allocation2 + $0xe] sm:$0x3] %vm965_vm4, %v894_v59 }
 0x139   : > { %715 = vst.msk [vmem:[#allocation2 + $0x5e] sm:$0x3] %vm699_vm14, %v658_v60  ;;  %566 = vrot.lane.b32.xlu1 %v2211_v19, %s1655_s24 }
 0x13a   : > { %546 = vrot.lane.b32.xlu0 %v1878_v20, %s1655_s24 }
 0x13b   : > { %v394_v62 = vpop.permute.xlu1 %393  ;;  %v918_v63 = vpop.permute.xlu0 %917 }
 0x13c   : > { %450 = vst.msk [vmem:[#allocation2 + $0x5e] sm:$0xfc] %vm429_vm6, %v394_v62 }
 0x13d   : > { %978 = vst.msk [vmem:[#allocation2 + $0x4e] sm:$0x3] %vm965_vm4, %v918_v63  ;;  %570 = vrot.lane.b32.xlu1 %v213_v61, %s1655_s24 }
 0x13e   : > { %568 = vrot.lane.b32.xlu0 %v2208_v16, %s1655_s24 }
 0x13f   : > { %v398_v0 = vpop.permute.xlu1 %397  ;;  %v396_v1 = vpop.permute.xlu0 %395  ;;  %v989_v2 = vld [vmem:[#allocation2 + $0x8] sm:$0xff] }
 0x140   : > { %452 = vst.msk [vmem:[#allocation2 + $0x6e] sm:$0x3] %vm433_vm7, %v398_v0  ;;  %1444 = vmatmul.mubr.msk.f32.vlgmr.msra.gmra.mxu0 %vm1014_vm3, %v989_v2 }
 0x141   : > { %451 = vst.msk [vmem:[#allocation2 + $0x66] sm:$0xff] %vm431_vm5, %v396_v1  ;;  %830 = vrot.lane.b32.xlu1 %v213_v61, %s1658_s29 }
 0x142   : > { %806 = vrot.lane.b32.xlu0 %v1878_v20, %s1658_s29 }
 0x143   : > { %v731_v3 = vpop.permute.xlu1 %730  ;;  %v729_v4 = vpop.permute.xlu0 %728 }
 0x144   : > { %v997_v5 = vld [vmem:[#allocation2 + $0x48] sm:$0xff]  ;;  %776 = vst.msk [vmem:[#allocation2 + $0x18] sm:$0xff] %vm772_vm15, %v731_v3  ;;  %775 = vst.msk [vmem:[#allocation2 + $0x10] sm:$0xff] %vm772_vm15, %v729_v4 }
 0x145   : > { %1456 = vmatmul.mubr.msk.f32.vlgmr.msra.gmra.mxu1 %vm1014_vm3, %v997_v5  ;;  %903 = vrot.lane.b32.xlu1 %v1802_v9, %s1659_s4 }
 0x146   : > { %901 = vrot.lane.b32.xlu0 %v1805_v10, %s1659_s4 }
 0x147   : > { %v747_v6 = vpop.permute.xlu1 %746  ;;  %v745_v12 = vpop.permute.xlu0 %744 }
 0x148   : > { %784 = vst.msk [vmem:[#allocation2 + $0x58] sm:$0xff] %vm772_vm15, %v747_v6  ;;  %783 = vst.msk [vmem:[#allocation2 + $0x50] sm:$0xff] %vm772_vm15, %v745_v12 }
 0x149   : > { %927 = vrot.lane.b32.xlu1 %v2208_v16, %s1659_s4 }
 0x14a   : > { %925 = vrot.lane.b32.xlu0 %v2211_v19, %s1659_s4 }
 0x14b   : > { %v469_v14 = vpop.permute.xlu1 %468  ;;  %v467_v15 = vpop.permute.xlu0 %466 }
 0x14c   : > { %512 = vst.msk [vmem:[#allocation2 + $0x28] sm:$0xff] %vm506_vm8, %v469_v14  ;;  %511 = vst.msk [vmem:[#allocation2 + $0x20] sm:$0xff] %vm506_vm8, %v467_v15 }
 0x14d   : > { %643 = vrot.lane.b32.xlu1 %v1802_v9, %s1656_s27 }
 0x14e   : > { %641 = vrot.lane.b32.xlu0 %v1805_v10, %s1656_s27 }
 0x14f   : > { %v485_v18 = vpop.permute.xlu1 %484  ;;  %v483_v22 = vpop.permute.xlu0 %482 }
 0x150   : > { %520 = vst.msk [vmem:[#allocation2 + $0x68] sm:$0xff] %vm506_vm8, %v485_v18  ;;  %519 = vst.msk [vmem:[#allocation2 + $0x60] sm:$0xff] %vm506_vm8, %v483_v22 }
 0x151   : > { %665 = vrot.lane.b32.xlu1 %v2211_v19, %s1656_s27 }
 0x152   : > { %645 = vrot.lane.b32.xlu0 %v1878_v20, %s1656_s27 }
 0x153   : > { %v799_v24 = vpop.permute.xlu1 %798  ;;  %v797_v25 = vpop.permute.xlu0 %796 }
 0x154   : > { %869 = vst.msk [vmem:[#allocation2 + $0x17] sm:$0xff] %vm864_vm1, %v799_v24 }
 0x155   : > { %868 = vst.msk [vmem:[#allocation2 + $0xf] sm:$0xfe] %vm862_vm0, %v797_v25  ;;  %669 = vrot.lane.b32.xlu1 %v213_v61, %s1656_s27 }
 0x156   : > { %667 = vrot.lane.b32.xlu0 %v2208_v16, %s1656_s27  ;;  %s1381_s27 = sshll.u32 %s175_s10, 7 }
 0x157   : > { %v823_v9 = vpop.permute.xlu1 %822  ;;  %v821_v10 = vpop.permute.xlu0 %820 }
 0x158   : > { %881 = vst.msk [vmem:[#allocation2 + $0x57] sm:$0xff] %vm864_vm1, %v823_v9 }
 0x159   : > { %880 = vst.msk [vmem:[#allocation2 + $0x4f] sm:$0xfe] %vm862_vm0, %v821_v10  ;;  %929 = vrot.lane.b32.xlu1 %v213_v61, %s1659_s4 }
 0x15a   : > { %905 = vrot.lane.b32.xlu0 %v1878_v20, %s1659_s4 }
 0x15b   : > { %v539_v26 = vpop.permute.xlu1 %538  ;;  %v537_v27 = vpop.permute.xlu0 %536 }
 0x15c   : > { %606 = vst.msk [vmem:[#allocation2 + $0x27] sm:$0xff] %vm2552_vm9, %v539_v26 }
 0x15d   : > { %605 = vst.msk [vmem:[#allocation2 + $0x1f] sm:$0xfe] %vm2551_vm10, %v537_v27  ;;  %738 = vrot.lane.b32.xlu1 %v1825_v13, %s1657_s28 }
 0x15e   : > { %736 = vrot.lane.b32.xlu0 %v1813_v11, %s1657_s28 }
 0x15f   : > { %v561_v30 = vpop.permute.xlu1 %560  ;;  %v541_v31 = vpop.permute.xlu0 %540 }
 0x160   : > { %617 = vst.msk [vmem:[#allocation2 + $0x5f] sm:$0xfe] %vm2551_vm10, %v561_v30  ;;  %vm2557_vm10 = vcmask 294146  }
 0x161   : > { %607 = vst.msk [vmem:[#allocation2 + $0x2f] sm:$0x1] %vm2550_vm11, %v541_v31  ;;  %754 = vrot.lane.b32.xlu1 %v215_v28, %s1657_s28 }
 0x162   : > { %752 = vrot.lane.b32.xlu0 %v214_v29, %s1657_s28 }
 0x163   : > { %v565_v20 = vpop.permute.xlu1 %564  ;;  %v563_v32 = vpop.permute.xlu0 %562 }
 0x164   : > { %619 = vst.msk [vmem:[#allocation2 + $0x6f] sm:$0x1] %vm2550_vm11, %v565_v20  ;;  %vm2556_vm11 = vcmask 294144  }
 0x165   : > { %618 = vst.msk [vmem:[#allocation2 + $0x67] sm:$0xff] %vm2552_vm9, %v563_v32  ;;  %810 = vrot.lane.b32.xlu1 %v1825_v13, %s1658_s29  ;;  %vm2558_vm9 = vmmov %vm2556_vm11 }
 0x166   : > { %808 = vrot.lane.b32.xlu0 %v1813_v11, %s1658_s29 }
 0x167   : > { %v825_v33 = vpop.permute.xlu1 %824  ;;  %v801_v34 = vpop.permute.xlu0 %800 }
 0x168   : > { %882 = vst.msk [vmem:[#allocation2 + $0x5f] sm:$0x1] %vm2553_vm2, %v825_v33  ;;  %870 = vst.msk [vmem:[#allocation2 + $0x1f] sm:$0x1] %vm2553_vm2, %v801_v34 }
 0x169   : > { %834 = vrot.lane.b32.xlu1 %v215_v28, %s1658_s29  ;;  %vm2559_vm2 = vmmov %vm2557_vm10 }
 0x16a   : > { %832 = vrot.lane.b32.xlu0 %v214_v29, %s1658_s29 }
 0x16b   : > { %v898_v36 = vpop.permute.xlu1 %897  ;;  %v896_v37 = vpop.permute.xlu0 %895 }
 0x16c   : > { %968 = vst.msk [vmem:[#allocation2 + $0x16] sm:$0xff] %vm2556_vm11, %v898_v36  ;;  %vm2566_vm11 = vcmask 254176  }
 0x16d   : > { %967 = vst.msk [vmem:[#allocation2 + $0xe] sm:$0xfc] %vm2557_vm10, %v896_v37  ;;  %836 = vrot.lane.b32.xlu1 %v216_v35, %s1658_s29 }
 0x16e   : > { %812 = vrot.lane.b32.xlu0 %v1885_v21, %s1658_s29 }
 0x16f   : > { %v922_v38 = vpop.permute.xlu1 %921  ;;  %v920_v39 = vpop.permute.xlu0 %919 }
 0x170   : > { %980 = vst.msk [vmem:[#allocation2 + $0x56] sm:$0xff] %vm2558_vm9, %v922_v38 }
 0x171   : > { %979 = vst.msk [vmem:[#allocation2 + $0x4e] sm:$0xfc] %vm2559_vm2, %v920_v39  ;;  %909 = vrot.lane.b32.xlu1 %v1825_v13, %s1659_s4  ;;  %vm2567_vm2 = vmmov %vm2566_vm11 }
 0x172   : > { %907 = vrot.lane.b32.xlu0 %v1813_v11, %s1659_s4 }
 0x173   : > { %v638_v40 = vpop.permute.xlu1 %637  ;;  %v636_v41 = vpop.permute.xlu0 %635 }
 0x174   : > { %v990_v42 = vld [vmem:[#allocation2 + $0x10] sm:$0xff]  ;;  %705 = vst.msk [vmem:[#allocation2 + $0x26] sm:$0xff] %vm697_vm12, %v638_v40 }
 0x175   : > { %704 = vst.msk [vmem:[#allocation2 + $0x1e] sm:$0xfc] %vm695_vm13, %v636_v41  ;;  %1446 = vmatprep.mubr.msk.f32.mxu0 %vm1014_vm3, %v990_v42  ;;  %933 = vrot.lane.b32.xlu1 %v215_v28, %s1659_s4 }
 0x176   : > { %931 = vrot.lane.b32.xlu0 %v214_v29, %s1659_s4 }
 0x177   : > { %v660_v43 = vpop.permute.xlu1 %659  ;;  %v640_v44 = vpop.permute.xlu0 %639 }
 0x178   : > { %v998_v45 = vld [vmem:[#allocation2 + $0x50] sm:$0xff]  ;;  %716 = vst.msk [vmem:[#allocation2 + $0x5e] sm:$0xfc] %vm695_vm13, %v660_v43 }
 0x179   : > { %706 = vst.msk [vmem:[#allocation2 + $0x2e] sm:$0x3] %vm699_vm14, %v640_v44  ;;  %1458 = vmatprep.mubr.msk.f32.mxu1 %vm1014_vm3, %v998_v45  ;;  %935 = vrot.lane.b32.xlu1 %v216_v35, %s1659_s4 }
 0x17a   : > { %911 = vrot.lane.b32.xlu0 %v1885_v21, %s1659_s4  ;;  %s2435_s4 = scalar_lea.vmem [#allocation3], %s1381_s27  ;;  %s1660_s27 = smov [#allocation3]  }
 0x17b   : > { %v664_v11 = vpop.permute.xlu1 %663  ;;  %v662_v13 = vpop.permute.xlu0 %661  ;;  %s1298_s16 = sshll.u32 %s2435_s4, 4  ;;  %s1562_s28 = sshll.u32 %s1660_s27, 4  ;;  %s2486_s16 = int_to_ptr.vmem [resolvable:$true] %s1298_s16  ;;  %s1563_s28 = int_to_ptr.vmem [resolvable:$false] %s1562_s28 }
 0x17c   : > { %718 = vst.msk [vmem:[#allocation2 + $0x6e] sm:$0x3] %vm699_vm14, %v664_v11  ;;  %s1558_s24 = scalar_lea.vmem %s2486_s16, 2048  ;;  %s1564_s29 = scalar_lea.vmem %s1563_s28, 4096 }
 0x17d   : > { %717 = vst.msk [vmem:[#allocation2 + $0x66] sm:$0xff] %vm697_vm12, %v662_v13  ;;  %p1559_p13 = scmp.ne.s32.totalorder %s2486_s16, %s1558_s24  ;;  %p1565_p2 = scmp.lt.s32.totalorder %s2486_s16, %s1563_s28 }
 0x17e   : > { %p1566_p4 = scmp.lt.s32.totalorder %s1564_s29, %s1558_s24 }
 0x17f   : > { %v924_v46 = vpop.permute.xlu1 %923  ;;  %v900_v7 = vpop.permute.xlu0 %899  ;;  %p1560_p0 = pnand %p1559_p13, %p1733_p3 }
 0x180   : > { %981 = vst.msk [vmem:[#allocation2 + $0x5e] sm:$0x3] %vm965_vm4, %v924_v46  ;;  %969 = vst.msk [vmem:[#allocation2 + $0x1e] sm:$0x3] %vm965_vm4, %v900_v7  ;;  %p1567_p5 = por %p1566_p4, %p1565_p2 }
 0x181   : > { %p1561_p1 = pneg %p1560_p0 }
 0x183   : > { %v378_v8 = vpop.permute.xlu1 %377  ;;  %v376_v16 = vpop.permute.xlu0 %375  ;;  %p1568_p6 = pnand %p1567_p5, %p1561_p1 }
 0x184   : > { %442 = vst.msk [vmem:[#allocation2 + $0x36] sm:$0xff] %vm431_vm5, %v378_v8  ;;  %v2421_v8 = vld [vmem:[%s2546_s2] ss:$0 sm:$0xff] }
 0x185   : > { %441 = vst.msk [vmem:[#allocation2 + $0x2e] sm:$0xfc] %vm429_vm6, %v376_v16 }
 0x187   : > { %v400_v19 = vpop.permute.xlu1 %399  ;;  %v380_v21 = vpop.permute.xlu0 %379  ;;  %v991_v23 = vld [vmem:[#allocation2 + $0x18] sm:$0xff] }
 0x188   : > { %v999_v47 = vld [vmem:[#allocation2 + $0x58] sm:$0xff]  ;;  %453 = vst.msk [vmem:[#allocation2 + $0x6e] sm:$0xfc] %vm429_vm6, %v400_v19  ;;  %1447 = vmatmul.mubr.msk.f32.gmra.mxu0 %vm1014_vm3, %v991_v23  ;;  %vm2561_vm6 = vcmask 162945   ;;  %v2428_v19 = vld [vmem:[%s2546_s2 + $0x1] ss:$0 sm:$0xff] }
 0x189   : > { %443 = vst.msk [vmem:[#allocation2 + $0x3e] sm:$0x3] %vm433_vm7, %v380_v21  ;;  %1459 = vmatmul.mubr.msk.f32.gmra.mxu1 %vm1014_vm3, %v999_v47 }
 0x18b   : > { %v404_v17 = vpop.permute.xlu1 %403  ;;  %v402_v48 = vpop.permute.xlu0 %401 }
 0x18c   : > { %455 = vst.msk [vmem:[#allocation2 + $0x7e] sm:$0x3] %vm433_vm7, %v404_v17  ;;  %vm2562_vm7 = vmmov %vm2561_vm6 }
 0x18d   : > { %454 = vst.msk [vmem:[#allocation2 + $0x76] sm:$0xff] %vm431_vm5, %v402_v48  ;;  %vm2560_vm5 = vcmask 162944  }
 0x18e   : > { %vm2565_vm10 = vmmov %vm2560_vm5 }
 0x18f   : > { %v735_v49 = vpop.permute.xlu1 %734  ;;  %v733_v50 = vpop.permute.xlu0 %732 }
 0x190   : > { %778 = vst.msk [vmem:[#allocation2 + $0x28] sm:$0xff] %vm772_vm15, %v735_v49  ;;  %777 = vst.msk [vmem:[#allocation2 + $0x20] sm:$0xff] %vm772_vm15, %v733_v50 }
 0x193   : > { %v751_v51 = vpop.permute.xlu1 %750  ;;  %v749_v52 = vpop.permute.xlu0 %748 }
 0x194   : > { %786 = vst.msk [vmem:[#allocation2 + $0x68] sm:$0xff] %vm772_vm15, %v751_v51  ;;  %785 = vst.msk [vmem:[#allocation2 + $0x60] sm:$0xff] %vm772_vm15, %v749_v52 }
 0x197   : > { %v473_v53 = vpop.permute.xlu1 %472  ;;  %v471_v54 = vpop.permute.xlu0 %470 }
 0x198   : > { %514 = vst.msk [vmem:[#allocation2 + $0x38] sm:$0xff] %vm506_vm8, %v473_v53  ;;  %513 = vst.msk [vmem:[#allocation2 + $0x30] sm:$0xff] %vm506_vm8, %v471_v54 }
 0x19b   : > { %v489_v55 = vpop.permute.xlu1 %488  ;;  %v487_v56 = vpop.permute.xlu0 %486 }
 0x19c   : > { %522 = vst.msk [vmem:[#allocation2 + $0x78] sm:$0xff] %vm506_vm8, %v489_v55  ;;  %521 = vst.msk [vmem:[#allocation2 + $0x70] sm:$0xff] %vm506_vm8, %v487_v56  ;;  %vm2563_vm8 = vcmask 155776  }
 0x19d   : > { %vm2564_vm9 = vmmov %vm2563_vm8 }
 0x19f   : > { %v805_v57 = vpop.permute.xlu1 %804  ;;  %v803_v58 = vpop.permute.xlu0 %802 }
 0x1a0   : > { %872 = vst.msk [vmem:[#allocation2 + $0x27] sm:$0xff] %vm864_vm1, %v805_v57 }
 0x1a1   : > { %871 = vst.msk [vmem:[#allocation2 + $0x1f] sm:$0xfe] %vm862_vm0, %v803_v58 }
 0x1a3   : > { %v829_v59 = vpop.permute.xlu1 %828 }
 0x1a4   : > { %v827_v60 = vpop.permute.xlu0 %826  ;;  %884 = vst.msk [vmem:[#allocation2 + $0x67] sm:$0xff] %vm864_vm1, %v829_v59 }
 0x1a5   : > { %883 = vst.msk [vmem:[#allocation2 + $0x5f] sm:$0xfe] %vm862_vm0, %v827_v60 }
 0x1a7   : > { %v545_v61 = vpop.permute.xlu1 %544 }
 0x1a8   : > { %v543_v62 = vpop.permute.xlu0 %542  ;;  %609 = vst.msk [vmem:[#allocation2 + $0x37] sm:$0xff] %vm2560_vm5, %v545_v61  ;;  %vm2568_vm5 = vcmask 294144  }
 0x1a9   : > { %608 = vst.msk [vmem:[#allocation2 + $0x2f] sm:$0xfe] %vm2561_vm6, %v543_v62  ;;  %vm2569_vm6 = vcmask 294146  }
 0x1ab   : > { %v567_v63 = vpop.permute.xlu1 %566 }
 0x1ac   : > { %v547_v0 = vpop.permute.xlu0 %546  ;;  %620 = vst.msk [vmem:[#allocation2 + $0x6f] sm:$0xfe] %vm2562_vm7, %v567_v63  ;;  %vm2570_vm7 = vmmov %vm2568_vm5 }
 0x1ad   : > { %610 = vst.msk [vmem:[#allocation2 + $0x3f] sm:$0x1] %vm2563_vm8, %v547_v0  ;;  %vm2571_vm8 = vmmov %vm2569_vm6 }
 0x1af   : > { %v571_v1 = vpop.permute.xlu1 %570 }
 0x1b0   : > { %v569_v2 = vpop.permute.xlu0 %568  ;;  %622 = vst.msk [vmem:[#allocation2 + $0x7f] sm:$0x1] %vm2564_vm9, %v571_v1  ;;  %vm2576_vm9 = vmmov %vm2568_vm5 }
 0x1b1   : > { %621 = vst.msk [vmem:[#allocation2 + $0x77] sm:$0xff] %vm2565_vm10, %v569_v2 }
 0x1b3   : > { %v831_v3 = vpop.permute.xlu1 %830 }
 0x1b4   : > { %v807_v4 = vpop.permute.xlu0 %806  ;;  %885 = vst.msk [vmem:[#allocation2 + $0x6f] sm:$0x1] %vm2566_vm11, %v831_v3 }
 0x1b5   : > { %873 = vst.msk [vmem:[#allocation2 + $0x2f] sm:$0x1] %vm2567_vm2, %v807_v4 }
 0x1b7   : > { %v904_v5 = vpop.permute.xlu1 %903 }
 0x1b8   : > { %v902_v6 = vpop.permute.xlu0 %901  ;;  %971 = vst.msk [vmem:[#allocation2 + $0x26] sm:$0xff] %vm2568_vm5, %v904_v5 }
 0x1b9   : > { %970 = vst.msk [vmem:[#allocation2 + $0x1e] sm:$0xfc] %vm2569_vm6, %v902_v6 }
 0x1bb   : > { %v928_v12 = vpop.permute.xlu1 %927 }
 0x1bc   : > { %v926_v14 = vpop.permute.xlu0 %925  ;;  %983 = vst.msk [vmem:[#allocation2 + $0x66] sm:$0xff] %vm2570_vm7, %v928_v12 }
 0x1bd   : > { %982 = vst.msk [vmem:[#allocation2 + $0x5e] sm:$0xfc] %vm2571_vm8, %v926_v14 }
 0x1bf   : > { %v644_v15 = vpop.permute.xlu1 %643 }
 0x1c0   : > { %v642_v18 = vpop.permute.xlu0 %641  ;;  %v992_v22 = vld [vmem:[#allocation2 + $0x20] sm:$0xff]  ;;  %708 = vst.msk [vmem:[#allocation2 + $0x36] sm:$0xff] %vm697_vm12, %v644_v15 }
 0x1c1   : > { %707 = vst.msk [vmem:[#allocation2 + $0x2e] sm:$0xfc] %vm695_vm13, %v642_v18  ;;  %1449 = vmatprep.mubr.msk.f32.mxu0 %vm1014_vm3, %v992_v22 }
 0x1c3   : > { %v666_v24 = vpop.permute.xlu1 %665 }
 0x1c4   : > { %v646_v25 = vpop.permute.xlu0 %645  ;;  %v1000_v9 = vld [vmem:[#allocation2 + $0x60] sm:$0xff]  ;;  %719 = vst.msk [vmem:[#allocation2 + $0x6e] sm:$0xfc] %vm695_vm13, %v666_v24  ;;  %vm2573_vm13 = vmmov %vm2567_vm2 }
 0x1c5   : > { %709 = vst.msk [vmem:[#allocation2 + $0x3e] sm:$0x3] %vm699_vm14, %v646_v25  ;;  %1461 = vmatprep.mubr.msk.f32.mxu1 %vm1014_vm3, %v1000_v9 }
 0x1c7   : > { %v670_v10 = vpop.permute.xlu1 %669 }
 0x1c8   : > { %v668_v26 = vpop.permute.xlu0 %667  ;;  %721 = vst.msk [vmem:[#allocation2 + $0x7e] sm:$0x3] %vm699_vm14, %v670_v10  ;;  %vm2574_vm14 = vmmov %vm2568_vm5 }
 0x1c9   : > { %720 = vst.msk [vmem:[#allocation2 + $0x76] sm:$0xff] %vm697_vm12, %v668_v26  ;;  %vm2572_vm12 = vmmov %vm2567_vm2 }
 0x1cb   : > { %v930_v27 = vpop.permute.xlu1 %929 }
 0x1cc   : > { %v906_v28 = vpop.permute.xlu0 %905  ;;  %984 = vst.msk [vmem:[#allocation2 + $0x6e] sm:$0x3] %vm965_vm4, %v930_v27 }
 0x1cd   : > { %972 = vst.msk [vmem:[#allocation2 + $0x2e] sm:$0x3] %vm965_vm4, %v906_v28 }
 0x1cf   : > { %v739_v29 = vpop.permute.xlu1 %738 }
 0x1d0   : > { %v737_v30 = vpop.permute.xlu0 %736  ;;  %780 = vst.msk [vmem:[#allocation2 + $0x38] sm:$0xff] %vm772_vm15, %v739_v29 }
 0x1d1   : > { %779 = vst.msk [vmem:[#allocation2 + $0x30] sm:$0xff] %vm772_vm15, %v737_v30 }
 0x1d3   : > { %v755_v31 = vpop.permute.xlu1 %754  ;;  %v1001_v33 = vld [vmem:[#allocation2 + $0x68] sm:$0xff] }
 0x1d4   : > { %v753_v20 = vpop.permute.xlu0 %752  ;;  %v993_v32 = vld [vmem:[#allocation2 + $0x28] sm:$0xff]  ;;  %788 = vst.msk [vmem:[#allocation2 + $0x78] sm:$0xff] %vm772_vm15, %v755_v31  ;;  %1462 = vmatmul.mubr.msk.f32.gmra.mxu1 %vm1014_vm3, %v1001_v33 }
 0x1d5   : > { %787 = vst.msk [vmem:[#allocation2 + $0x70] sm:$0xff] %vm772_vm15, %v753_v20  ;;  %1450 = vmatmul.mubr.msk.f32.gmra.mxu0 %vm1014_vm3, %v993_v32  ;;  %vm2575_vm15 = vmmov %vm2569_vm6 }
 0x1d7   : > { %v811_v34 = vpop.permute.xlu1 %810 }
 0x1d8   : > { %v809_v35 = vpop.permute.xlu0 %808  ;;  %875 = vst.msk [vmem:[#allocation2 + $0x37] sm:$0xff] %vm864_vm1, %v811_v34 }
 0x1d9   : > { %874 = vst.msk [vmem:[#allocation2 + $0x2f] sm:$0xfe] %vm862_vm0, %v809_v35 }
 0x1db   : > { %v835_v36 = vpop.permute.xlu1 %834 }
 0x1dc   : > { %v833_v37 = vpop.permute.xlu0 %832  ;;  %887 = vst.msk [vmem:[#allocation2 + $0x77] sm:$0xff] %vm864_vm1, %v835_v36  ;;  %vm2577_vm1 = vmmov %vm2569_vm6 }
 0x1dd   : > { %886 = vst.msk [vmem:[#allocation2 + $0x6f] sm:$0xfe] %vm862_vm0, %v833_v37 }
 0x1df   : > { %v837_v38 = vpop.permute.xlu1 %836 }
 0x1e0   : > { %v813_v39 = vpop.permute.xlu0 %812  ;;  %888 = vst.msk [vmem:[#allocation2 + $0x7f] sm:$0x1] %vm2572_vm12, %v837_v38 }
 0x1e1   : > { %876 = vst.msk [vmem:[#allocation2 + $0x3f] sm:$0x1] %vm2573_vm13, %v813_v39 }
 0x1e3   : > { %v910_v40 = vpop.permute.xlu1 %909 }
 0x1e4   : > { %v908_v41 = vpop.permute.xlu0 %907  ;;  %974 = vst.msk [vmem:[#allocation2 + $0x36] sm:$0xff] %vm2574_vm14, %v910_v40 }
 0x1e5   : > { %973 = vst.msk [vmem:[#allocation2 + $0x2e] sm:$0xfc] %vm2575_vm15, %v908_v41 }
 0x1e7   : > { %v934_v42 = vpop.permute.xlu1 %933 }
 0x1e8   : > { %v932_v43 = vpop.permute.xlu0 %931  ;;  %986 = vst.msk [vmem:[#allocation2 + $0x76] sm:$0xff] %vm2576_vm9, %v934_v42 }
 0x1e9   : > { %985 = vst.msk [vmem:[#allocation2 + $0x6e] sm:$0xfc] %vm2577_vm1, %v932_v43 }
 0x1eb   : > { %v936_v44 = vpop.permute.xlu1 %935 }
 0x1ec   : > { %v912_v45 = vpop.permute.xlu0 %911  ;;  %v994_v11 = vld [vmem:[#allocation2 + $0x30] sm:$0xff]  ;;  %987 = vst.msk [vmem:[#allocation2 + $0x7e] sm:$0x3] %vm965_vm4, %v936_v44 }
 0x1ed   : > { %975 = vst.msk [vmem:[#allocation2 + $0x3e] sm:$0x3] %vm965_vm4, %v912_v45  ;;  %1452 = vmatprep.mubr.msk.f32.mxu0 %vm1014_vm3, %v994_v11 }
 0x1f0   : > { %v1002_v13 = vld [vmem:[#allocation2 + $0x70] sm:$0xff] }
 0x1f1   : > { %1464 = vmatprep.mubr.msk.f32.mxu1 %vm1014_vm3, %v1002_v13 }
 0x1f3   : > { %v1003_v7 = vld [vmem:[#allocation2 + $0x78] sm:$0xff] }
 0x1f4   : > { %v995_v46 = vld [vmem:[#allocation2 + $0x38] sm:$0xff]  ;;  %1465 = vmatmul.mubr.msk.f32.gmra.mxu1 %vm1014_vm3, %v1003_v7 }
 0x1f5   : > { %1453 = vmatmul.mubr.msk.f32.gmra.mxu0 %vm1014_vm3, %v995_v46 }
 0x200   : > { %v1445_v16 = vpop.f32.mrf.mxu0 }
 0x201   : > { %v1139_v21 = vadd.f32 %v1445_v16, %v2421_v8 }
 0x202   : > { %v1133_v23 = vpop.f32.mrf.mxu0 }
 0x203   : > { %vm1213_vm0 = vcmp.ge.f32.partialorder %v1139_v21, 0.0  ;;  %v1234_v47 = vmul.f32 %v2428_v19, %v1139_v21  ;;  %v1134_v17 = vadd.f32 %v2421_v8, %v1133_v23 }
 0x205   : > { %v1457_v48 = vpop.f32.mrf.mxu1  ;;  %v1250_v49 = vsel %vm1213_vm0, %v1139_v21, %v1234_v47  ;;  %vm1212_vm3 = vcmp.ge.f32.partialorder %v1134_v17, 0.0  ;;  %v1233_v50 = vmul.f32 %v2428_v19, %v1134_v17 }
 0x206   : > { %v1179_v51 = vadd.f32 %v1457_v48, %v2421_v8  ;;  %1266 = vst [vmem:[%s2435_s4 + $0x8] sm:$0xff] %v1250_v49 }
 0x207   : > { %v1173_v52 = vpop.f32.mrf.mxu1  ;;  %v1249_v53 = vsel %vm1212_vm3, %v1134_v17, %v1233_v50 }
 0x208   : > { %vm1221_vm4 = vcmp.ge.f32.partialorder %v1179_v51, 0.0  ;;  %v1242_v54 = vmul.f32 %v2428_v19, %v1179_v51  ;;  %v1174_v55 = vadd.f32 %v2421_v8, %v1173_v52  ;;  %1265 = vst [vmem:[%s2435_s4] sm:$0xff] %v1249_v53 }
 0x20a   : > { %v1258_v56 = vsel %vm1221_vm4, %v1179_v51, %v1242_v54  ;;  %vm1220_vm10 = vcmp.ge.f32.partialorder %v1174_v55, 0.0  ;;  %v1241_v57 = vmul.f32 %v2428_v19, %v1174_v55 }
 0x20b   : > { %1274 = vst [vmem:[%s2435_s4 + $0x48] sm:$0xff] %v1258_v56 }
 0x20c   : > { %v1257_v58 = vsel %vm1220_vm10, %v1174_v55, %v1241_v57 }
 0x20d   : > { %1273 = vst [vmem:[%s2435_s4 + $0x40] sm:$0xff] %v1257_v58 }
 0x248   : > { %v1448_v59 = vpop.f32.mrf.mxu0 }
 0x249   : > { %v1460_v60 = vpop.f32.mrf.mxu1  ;;  %v1149_v61 = vadd.f32 %v1448_v59, %v2421_v8 }
 0x24a   : > { %v1189_v62 = vadd.f32 %v1460_v60, %v2421_v8  ;;  %v1143_v63 = vpop.f32.mrf.mxu0 }
 0x24b   : > { %v1183_v0 = vpop.f32.mrf.mxu1  ;;  %vm1215_vm11 = vcmp.ge.f32.partialorder %v1149_v61, 0.0  ;;  %v1236_v1 = vmul.f32 %v2428_v19, %v1149_v61  ;;  %v1144_v3 = vadd.f32 %v2421_v8, %v1143_v63 }
 0x24c   : > { %vm1223_vm2 = vcmp.ge.f32.partialorder %v1189_v62, 0.0  ;;  %v1244_v2 = vmul.f32 %v2428_v19, %v1189_v62  ;;  %v1184_v4 = vadd.f32 %v2421_v8, %v1183_v0 }
 0x24d   : > { %v1252_v5 = vsel %vm1215_vm11, %v1149_v61, %v1236_v1  ;;  %vm1214_vm5 = vcmp.ge.f32.partialorder %v1144_v3, 0.0  ;;  %v1235_v12 = vmul.f32 %v2428_v19, %v1144_v3 }
 0x24e   : > { %v1260_v6 = vsel %vm1223_vm2, %v1189_v62, %v1244_v2  ;;  %1268 = vst [vmem:[%s2435_s4 + $0x18] sm:$0xff] %v1252_v5  ;;  %vm1222_vm6 = vcmp.ge.f32.partialorder %v1184_v4, 0.0  ;;  %v1243_v14 = vmul.f32 %v2428_v19, %v1184_v4 }
 0x24f   : > { %1276 = vst [vmem:[%s2435_s4 + $0x58] sm:$0xff] %v1260_v6  ;;  %v1251_v15 = vsel %vm1214_vm5, %v1144_v3, %v1235_v12 }
 0x250   : > { %v1259_v18 = vsel %vm1222_vm6, %v1184_v4, %v1243_v14  ;;  %1267 = vst [vmem:[%s2435_s4 + $0x10] sm:$0xff] %v1251_v15 }
 0x251   : > { %1275 = vst [vmem:[%s2435_s4 + $0x50] sm:$0xff] %v1259_v18 }
 0x294   : > { %v1463_v24 = vpop.f32.mrf.mxu1 }
 0x295   : > { %v1451_v22 = vpop.f32.mrf.mxu0  ;;  %v1199_v9 = vadd.f32 %v1463_v24, %v2421_v8 }
 0x296   : > { %v1159_v25 = vadd.f32 %v1451_v22, %v2421_v8  ;;  %v1193_v26 = vpop.f32.mrf.mxu1 }
 0x297   : > { %v1153_v10 = vpop.f32.mrf.mxu0  ;;  %vm1225_vm8 = vcmp.ge.f32.partialorder %v1199_v9, 0.0  ;;  %v1246_v28 = vmul.f32 %v2428_v19, %v1199_v9  ;;  %v1194_v30 = vadd.f32 %v2421_v8, %v1193_v26 }
 0x298   : > { %vm1217_vm7 = vcmp.ge.f32.partialorder %v1159_v25, 0.0  ;;  %v1238_v27 = vmul.f32 %v2428_v19, %v1159_v25  ;;  %v1154_v29 = vadd.f32 %v2421_v8, %v1153_v10 }
 0x299   : > { %v1262_v20 = vsel %vm1225_vm8, %v1199_v9, %v1246_v28  ;;  %vm1224_vm13 = vcmp.ge.f32.partialorder %v1194_v30, 0.0  ;;  %v1245_v33 = vmul.f32 %v2428_v19, %v1194_v30 }
 0x29a   : > { %v1254_v31 = vsel %vm1217_vm7, %v1159_v25, %v1238_v27  ;;  %1278 = vst [vmem:[%s2435_s4 + $0x68] sm:$0xff] %v1262_v20  ;;  %vm1216_vm12 = vcmp.ge.f32.partialorder %v1154_v29, 0.0  ;;  %v1237_v32 = vmul.f32 %v2428_v19, %v1154_v29 }
 0x29b   : > { %1270 = vst [vmem:[%s2435_s4 + $0x28] sm:$0xff] %v1254_v31  ;;  %v1261_v35 = vsel %vm1224_vm13, %v1194_v30, %v1245_v33 }
 0x29c   : > { %v1253_v34 = vsel %vm1216_vm12, %v1154_v29, %v1237_v32  ;;  %1277 = vst [vmem:[%s2435_s4 + $0x60] sm:$0xff] %v1261_v35 }
 0x29d   : > { %1269 = vst [vmem:[%s2435_s4 + $0x20] sm:$0xff] %v1253_v34 }
 0x2b4   : > { %v1466_v37 = vpop.f32.mrf.mxu1 }
 0x2b5   : > { %v1454_v36 = vpop.f32.mrf.mxu0  ;;  %v1209_v39 = vadd.f32 %v1466_v37, %v2421_v8 }
 0x2b6   : > { %v1169_v38 = vadd.f32 %v1454_v36, %v2421_v8  ;;  %v1203_v41 = vpop.f32.mrf.mxu1 }
 0x2b7   : > { %v1163_v40 = vpop.f32.mrf.mxu0  ;;  %vm1227_vm15 = vcmp.ge.f32.partialorder %v1209_v39, 0.0  ;;  %v1248_v43 = vmul.f32 %v2428_v19, %v1209_v39  ;;  %v1204_v45 = vadd.f32 %v2421_v8, %v1203_v41 }
 0x2b8   : > { %vm1219_vm14 = vcmp.ge.f32.partialorder %v1169_v38, 0.0  ;;  %v1240_v42 = vmul.f32 %v2428_v19, %v1169_v38  ;;  %v1164_v44 = vadd.f32 %v2421_v8, %v1163_v40 }
 0x2b9   : > { %v1264_v13 = vsel %vm1227_vm15, %v1209_v39, %v1248_v43  ;;  %vm1226_vm1 = vcmp.ge.f32.partialorder %v1204_v45, 0.0  ;;  %v1247_v7 = vmul.f32 %v2428_v19, %v1204_v45 }
 0x2ba   : > { %v1256_v11 = vsel %vm1219_vm14, %v1169_v38, %v1240_v42  ;;  %1280 = vst [vmem:[%s2435_s4 + $0x78] sm:$0xff] %v1264_v13  ;;  %vm1218_vm9 = vcmp.ge.f32.partialorder %v1164_v44, 0.0  ;;  %v1239_v46 = vmul.f32 %v2428_v19, %v1164_v44 }
 0x2bb   : > { %1272 = vst [vmem:[%s2435_s4 + $0x38] sm:$0xff] %v1256_v11  ;;  %v1263_v16 = vsel %vm1226_vm1, %v1204_v45, %v1247_v7 }
 0x2bc   : > { %v1255_v8 = vsel %vm1218_vm9, %v1164_v44, %v1239_v46  ;;  %1279 = vst [vmem:[%s2435_s4 + $0x70] sm:$0xff] %v1263_v16 }
 0x2bd   : > { %1271 = vst [vmem:[%s2435_s4 + $0x30] sm:$0xff] %v1255_v8 }
 0x2be   : > { %1571 = shalt.err (!%p1568_p6)
}
 0x2bf   : > { %s1572_s10 = scalar_lea.hbm %s2484_s8, 2048  ;;  %s1576_s11 = scalar_lea.hbm %s2547_s3, 8192 }
 0x2c0   : > { %p1573_p7 = scmp.ne.s32.totalorder %s2484_s8, %s1572_s10  ;;  %p1577_p11 = scmp.lt.s32.totalorder %s2484_s8, %s2547_s3 }
 0x2c1   : > { %p1578_p12 = scmp.lt.s32.totalorder %s1576_s11, %s1572_s10 }
 0x2c2   : > { %p1574_p9 = pnand %p1573_p7, %p1733_p3 }
 0x2c3   : > { %p1579_p13 = por %p1578_p12, %p1577_p11 }
 0x2c4   : > { %p1575_p10 = pneg %p1574_p9 }
 0x2c6   : > { %p1580_p0 = pnand %p1579_p13, %p1575_p10 }
 0x2c8   : > { %1583 = shalt.err (!%p1580_p0)
}
 0x2c9   : > { %s1661_s6 = smov 128  }
 0x2ca   : > { %1478 = dma.vmem_to_hbm [thread:$0]  (%p1733_p3), %s2486_s16, 2048, %s2484_s8, %s2492_s21, %s1661_s6, %s1661_s6, %s1653_s20  }
 0x2cb PF: > { %p1484_p1 = scmp.ge.s32.totalorder %s1650_s19, 2  ;;  %s1313_s7 = sand.u32 1, %s1622_s12  }
 0x2cc   : > { %s1314_s24 = scalar_lea.sflag [#allocation4], %s1313_s7 }
 0x2cd   : > { %p1481_p2 = pnand %p1484_p1, %p1742_p8 }
 0x2cf   : > { %p1482_p4 = pneg %p1481_p2 }
 0x2d1   : > { %1617 = dma.done.wait (%p1482_p4), %s1314_s24, 2048  }
 0x2d2   : > { %1619 = vsyncadd (%p1482_p4), %s1314_s24, 4294965248  ;;  %s16_s19 = sadd.s32 1, %s1650_s19   ;;  %s2578_s12 = smov %s1626_s13 }
 0x2d3   : > { %p13_p5 = scmp.ge.s32.totalorder %s16_s19, 6   ;;  %s2579_s13 = smov %s1630_s14 }
 0x2d4   : > { %s2580_s14 = smov %s1751_s30  ;;  %s2581_s15 = smov %s1642_s17 }
 0x2d5   : > { %s2582_s16 = smov %s1646_s18  ;;  %s2583_s17 = smov %s2586_s22 }
 0x2d6   : > { %s2584_s18 = smov %s2590_s23  ;;  %15 = sbr.rel (!%p13_p5) target bundleno = 5 (0x5), region = 68 }
 0x2db   :  { %1319 = vsyncpa [#allocation4], 1 }
 0x2dc   :  { %1321 = vsyncpa [#allocation4 + $0x1], 1 }

</bundles_post_ra>
